<compile_context>
chip_gen: v6e
topology: v6e:2x2x1
jax: 0.10.0
libtpu: 0.0.40
codegen_flags: <defaults>
</compile_context>

<pallas_src>
import math
from functools import partial

import jax
import jax.numpy as jnp
from jax.experimental import pallas as pl
from jax.experimental.pallas import tpu as pltpu

MP_SILU_SCALE = 1.0 / 0.596


# --------------------------------------------------------------------------
# Parameter glue: EDM2 MPConv forced weight normalization (eval-mode path).
# --------------------------------------------------------------------------
def mp_weight(w, gain=1.0, eps=1e-4):
    out_c = w.shape[0]
    fan_in = 1
    for d in w.shape[1:]:
        fan_in *= d
    norm = jnp.sqrt(jnp.sum(jnp.square(w.reshape(out_c, -1)), axis=1))
    norm = eps + norm / math.sqrt(fan_in)
    w = w / norm.reshape((out_c,) + (1,) * (w.ndim - 1))
    return w * (gain / math.sqrt(fan_in))


def _pick_row_tile(n, max_tile=2048):
    """Largest row tile <= max_tile that evenly divides n (multiple of 8)."""
    if n <= max_tile:
        return n
    t = max_tile - (max_tile % 8)
    while t >= 8:
        if n % t == 0:
            return t
        t -= 8
    return n  # pathological n: single block


# --------------------------------------------------------------------------
# Kernel 1: conv_skip (1x1 MPConv == channel matmul) fused with normalize().
# bf16 in / bf16 out (memory-bound), f32 normalization math.
# --------------------------------------------------------------------------
def _skip_norm_kernel(x_ref, w_ref, o_ref):
    y = jnp.dot(x_ref[...], w_ref[...], preferred_element_type=jnp.float32)
    rms = jnp.sqrt(jnp.mean(y * y, axis=-1, keepdims=True))
    o_ref[...] = (y / (1e-4 + rms)).astype(o_ref.dtype)


def skip_norm(x_flat, w_bf16):
    n, cin = x_flat.shape
    cout = w_bf16.shape[1]
    tile = _pick_row_tile(n)
    return pl.pallas_call(
        _skip_norm_kernel,
        out_shape=jax.ShapeDtypeStruct((n, cout), jnp.bfloat16),
        grid=(n // tile,),
        in_specs=[pl.BlockSpec((tile, cin), lambda i: (i, 0)),
                  pl.BlockSpec((cin, cout), lambda i: (0, 0))],
        out_specs=pl.BlockSpec((tile, cout), lambda i: (i, 0)),
        compiler_params=pltpu.CompilerParams(dimension_semantics=("parallel",)),
    )(x_flat, w_bf16)


# --------------------------------------------------------------------------
# Kernel 2: MPCausal3DGatedConv hot path — 3x3x3 conv, causal along T,
# SAME-padded in H/W.  One grid step = one (batch, output-frame) pair; the
# three temporal taps arrive as three per-frame blocks of the T-padded input.
# kw is folded into the contraction axis -> 9 bf16 MXU matmuls with K=3*Cin,
# value-accumulated (no f32 scratch round trips), GLU-style magnitude-
# preserving gate, and a fused per-mode epilogue:
#   mode='res0': out = mp_silu(bmult(main * mp_silu(gate), c))
#   mode='res1': out = clip(mp_sum(skip, main * mp_silu(gate), res_balance))
# TODO(synk): reference source of MPCausal3DGatedConv was not provided; the
# gating is assumed GLU-style (main * mp_silu(gate)) and emb/c_noise are not
# consumed inside the conv (emb conditioning happens in the Block via bmult).
# --------------------------------------------------------------------------
def _gated_conv3d_kernel(f0_ref, f1_ref, f2_ref, w_ref, extra_ref, o_ref,
                         s_ref, *, mode, res_balance, clip_act):
    _, _, H, W, cin = f0_ref.shape
    cout = o_ref.shape[-1]
    M = H * W

    # Stage 1: per temporal tap, build a bf16 (H+2, W, 3*Cin) view with the
    # three kw shifts stacked along lanes.  mp_silu (res0 only) is applied
    # once per frame here.  Interior stores are lane/sublane aligned; only
    # the two H-halo rows are zeroed (interior is fully overwritten).
    zcol = jnp.zeros((H, 1, cin), jnp.float32)
    zrow = jnp.zeros((1, W, 3 * cin), s_ref.dtype)
    for kt, f_ref in enumerate((f0_ref, f1_ref, f2_ref)):
        fr = f_ref[0, 0].astype(jnp.float32)
        if mode == 'res0':
            fr = jax.nn.silu(fr) * MP_SILU_SCALE
        right = jnp.concatenate([zcol, fr[:, :W - 1, :]], axis=1)   # kw = 0 taps
        left = jnp.concatenate([fr[:, 1:, :], zcol], axis=1)        # kw = 2 taps
        s_ref[kt, 1:1 + H, :, 0:cin] = right.astype(s_ref.dtype)
        s_ref[kt, 1:1 + H, :, cin:2 * cin] = fr.astype(s_ref.dtype)
        s_ref[kt, 1:1 + H, :, 2 * cin:3 * cin] = left.astype(s_ref.dtype)
        s_ref[kt, 0:1, :, :] = zrow
        s_ref[kt, H + 1:H + 2, :, :] = zrow

    # Stage 2: 9 matmuls, K = 3*Cin each, accumulated as a value so Mosaic
    # keeps the running sum in vregs / the MXU result buffer (no per-tap
    # f32 VMEM read-modify-write passes).
    acc = None
    for kt in range(3):
        for kh in range(3):
            patch = s_ref[kt, kh:kh + H, :, :].reshape(M, 3 * cin)
            d = jnp.dot(patch, w_ref[kt * 3 + kh, :, :],
                        preferred_element_type=jnp.float32)
            acc = d if acc is None else acc + d

    # Stage 3: fused epilogue.
    y = acc[:, :cout] * (jax.nn.silu(acc[:, cout:]) * MP_SILU_SCALE)
    if mode == 'res0':
        cvec = extra_ref[0].astype(jnp.float32)               # (1, Cout)
        y = jax.nn.silu(y * cvec) * MP_SILU_SCALE             # bmult + mp_silu
    else:
        skip = extra_ref[...].astype(jnp.float32).reshape(M, cout)
        tb = res_balance
        scale = 1.0 / math.sqrt((1.0 - tb) ** 2 + tb ** 2)
        y = (skip * (1.0 - tb) + y * tb) * scale              # mp_sum residual
        if clip_act is not None:
            y = jnp.clip(y, -clip_act, clip_act)              # clip_act
    o_ref[...] = y.reshape(o_ref.shape).astype(o_ref.dtype)


def gated_causal_conv3d(x_in, w_packed, extra, cache_frames, *, mode,
                        res_balance=0.3, clip_act=256.0, out_dtype=jnp.float32):
    # x_in: [B, T, H, W, Cin]; output frame t sees input frames t-2, t-1, t.
    b, t, h, w, cin = x_in.shape
    cout = w_packed.shape[-1] // 2
    if cache_frames is None:
        front = jnp.zeros((b, 2, h, w, cin), x_in.dtype)
    else:
        front = cache_frames.astype(x_in.dtype)
    # Causal T padding: temporal tap kt of output frame t reads x_full[t+kt].
    x_full = jnp.concatenate([front, x_in], axis=1)          # [B, T+2, H, W, Cin]

    if mode == 'res0':
        extra_spec = pl.BlockSpec((1, 1, cout), lambda i, j: (i, 0, 0))
    else:
        # stream only the matching per-frame skip tile
        extra_spec = pl.BlockSpec((1, 1, h, w, cout), lambda i, j: (i, j, 0, 0, 0))

    kern = partial(_gated_conv3d_kernel, mode=mode,
                   res_balance=float(res_balance),
                   clip_act=None if clip_act is None else float(clip_act))

    # TODO(synk): for very large H/W or Cin/Cout >= 512, add an H grid axis
    # (1-row halo) and stream weight tap-groups from HBM (memory_space=pl.ANY)
    # so a single step stays within v7x's 64 MiB VMEM.
    y = pl.pallas_call(
        kern,
        out_shape=jax.ShapeDtypeStruct((b, t, h, w, cout), out_dtype),
        grid=(b, t),
        in_specs=[pl.BlockSpec((1, 1, h, w, cin), lambda i, j: (i, j, 0, 0, 0)),
                  pl.BlockSpec((1, 1, h, w, cin), lambda i, j: (i, j + 1, 0, 0, 0)),
                  pl.BlockSpec((1, 1, h, w, cin), lambda i, j: (i, j + 2, 0, 0, 0)),
                  pl.BlockSpec((9, 3 * cin, 2 * cout), lambda i, j: (0, 0, 0)),
                  extra_spec],
        out_specs=pl.BlockSpec((1, 1, h, w, cout), lambda i, j: (i, j, 0, 0, 0)),
        scratch_shapes=[
            pltpu.VMEM((3, h + 2, w, 3 * cin), jnp.bfloat16),   # kw-folded views
        ],
        compiler_params=pltpu.CompilerParams(
            dimension_semantics=("parallel", "parallel"),
            vmem_limit_bytes=48 * 1024 * 1024),
    )(x_full, x_full, x_full, w_packed, extra)

    # streaming cache = last 2 (pre-activation) input frames of this conv
    new_cache = x_full[:, -2:]
    return y, new_cache


# --------------------------------------------------------------------------
# Block (flavor='enc', resample='keep', attention off) — JAX/Pallas version.
# --------------------------------------------------------------------------
class BlockPallas:
    def __init__(self, in_channels, out_channels, emb_channels, key,
                 flavor='enc', resample_mode='keep', attention=False,
                 channels_per_head=64, res_balance=0.3, attn_balance=0.3,
                 clip_act=256):
        assert flavor == 'enc'          # TODO(synk): 'dec' path not implemented
        assert resample_mode == 'keep'  # TODO(synk): resample up/down not implemented
        self.in_channels = in_channels
        self.out_channels = out_channels
        self.res_balance = res_balance
        self.clip_act = clip_act
        self.num_heads = out_channels // channels_per_head if attention else 0
        ks = jax.random.split(key, 6)
        # Parameter values are synthetic.  torch inits emb_gain to 0 (which
        # would make c == 1); use a nonzero deterministic value so the emb
        # path is actually exercised.
        self.emb_gain = jnp.float32(0.7)
        w_emb = jax.random.normal(ks[0], (out_channels, emb_channels), jnp.float32)
        c0_in = out_channels  # flavor == 'enc'
        w_res0_main = jax.random.normal(ks[1], (out_channels, c0_in, 3, 3, 3), jnp.float32)
        w_res0_gate = jax.random.normal(ks[2], (out_channels, c0_in, 3, 3, 3), jnp.float32)
        w_res1_main = jax.random.normal(ks[3], (out_channels, out_channels, 3, 3, 3), jnp.float32)
        w_res1_gate = jax.random.normal(ks[4], (out_channels, out_channels, 3, 3, 3), jnp.float32)
        w_skip = (jax.random.normal(ks[5], (out_channels, in_channels, 1, 1), jnp.float32)
                  if in_channels != out_channels else None)

        # Precompute MP-normalized, MXU-ready weights ONCE (static in eval).
        self.w_emb_t = jnp.transpose(mp_weight(w_emb, gain=1.0))            # [emb_c, Cout] f32
        self.w_skip_t = (jnp.transpose(
            mp_weight(w_skip, gain=1.0).reshape(out_channels, in_channels)
        ).astype(jnp.bfloat16) if w_skip is not None else None)             # [Cin, Cout] bf16
        self.w_res0_packed = self._pack_taps(w_res0_main, w_res0_gate)      # [9, 3*Cin, 2*Cout] bf16
        self.w_res1_packed = self._pack_taps(w_res1_main, w_res1_gate)

    @staticmethod
    def _pack_taps(w_main, w_gate):
        # [Cout, Cin, 3, 3, 3] pair -> MP-normalized [9, 3*Cin, 2*Cout] bf16:
        # tap index = kt*3 + kh, contraction axis = (kw, cin) so every matmul
        # has K = 3*Cin, main || gate concatenated along the lane axis.
        def taps(w):
            w = mp_weight(w, gain=1.0)
            cout, cin = w.shape[0], w.shape[1]
            wt = jnp.transpose(w, (2, 3, 4, 1, 0))        # (kt, kh, kw, cin, cout)
            return wt.reshape(9, 3 * cin, cout)
        return jnp.concatenate([taps(w_main), taps(w_gate)],
                               axis=-1).astype(jnp.bfloat16)

    def __call__(self, x, emb, batch_size, c_noise, cache=None, update_cache=False):
        # x: [B*T, C_in, H, W] (PyTorch NCHW frames), emb: [B, emb_channels]
        del c_noise  # TODO(synk): consumed inside the (unavailable) reference gated conv
        if cache is None:
            cache = {}
        bt, cin, hh, ww = x.shape
        tt = bt // batch_size
        cout = self.out_channels

        # layout: NCHW frames -> [B, T, H, W, C] (channels -> lanes), bf16 I/O
        xc = jnp.transpose(x, (0, 2, 3, 1)).reshape(batch_size, tt, hh, ww, cin)
        xc = xc.astype(jnp.bfloat16)

        # resample(mode='keep') -> identity.
        # enc branch: conv_skip (1x1) + normalize over channels (fused kernel).
        assert self.w_skip_t is not None
        xn = skip_norm(xc.reshape(-1, cin), self.w_skip_t)                   # bf16
        xn = xn.reshape(batch_size, tt, hh, ww, cout)

        # c = emb_linear(emb, gain=emb_gain) + 1  (tiny matmul -> plain jnp)
        c = jnp.dot(emb, self.w_emb_t) * self.emb_gain + 1.0
        c3 = c.reshape(batch_size, 1, cout)

        # y = mp_silu(bmult(conv_res0(mp_silu(x)), c)) — input silu + bmult +
        # output mp_silu all fused into the conv kernel.  Dropout skipped
        # (eval mode).
        y, cache_res0 = gated_causal_conv3d(
            xn, self.w_res0_packed, c3, cache.get('conv_res0', None),
            mode='res0', out_dtype=jnp.bfloat16)

        # out = clip(mp_sum(x, conv_res1(y), res_balance)); attn identity
        # (num_heads == 0) — mp_sum + clip fused into the conv epilogue.
        out, cache_res1 = gated_causal_conv3d(
            y, self.w_res1_packed, xn, cache.get('conv_res1', None),
            mode='res1', res_balance=self.res_balance, clip_act=self.clip_act,
            out_dtype=jnp.float32)
        # TODO(synk): FrameAttention/VideoAttention sources not provided; with
        # attention=False (num_heads=0) the attention block is a pass-through.

        new_cache = dict(cache)
        if update_cache:
            new_cache['conv_res0'] = cache_res0
            new_cache['conv_res1'] = cache_res1
        new_cache.setdefault('attn', None)

        # back to PyTorch NCHW frame layout
        out = out.reshape(bt, hh, ww, cout)
        out = jnp.transpose(out, (0, 3, 1, 2))
        return out, new_cache


if __name__ == "__main__":
    key = jax.random.PRNGKey(0)
    k_param, k_x, k_emb, k_noise = jax.random.split(key, 4)

    B, T, H, W = 2, 3, 8, 8
    in_c, out_c, emb_c = 64, 128, 64

    block = BlockPallas(in_c, out_c, emb_c, k_param)

    x = jax.random.normal(k_x, (B * T, in_c, H, W), jnp.float32)
    emb = jax.random.normal(k_emb, (B, emb_c), jnp.float32)
    c_noise = jax.random.normal(k_noise, (B * T,), jnp.float32)

    out, cache = block(x, emb, B, c_noise, cache=None, update_cache=True)
    jax.block_until_ready(out)

    assert out.shape == (B * T, out_c, H, W)
    assert bool(jnp.all(jnp.isfinite(out)))
    print("KERNEL_OK")
</pallas_src>

<mosaic_0001>
module attributes {stable_mosaic.version = 11 : i64} {
  func.func @_skip_norm_kernel(%arg0: i32, %arg1: memref<384x64xbf16, #tpu.memory_space<vmem>>, %arg2: memref<64x128xbf16, #tpu.memory_space<vmem>>, %arg3: memref<384x128xbf16, #tpu.memory_space<vmem>>) attributes {dimension_semantics = [#tpu.dimension_semantics<parallel>], iteration_bounds = array<i64: 1>, scalar_prefetch = 0 : i64, scratch_operands = 0 : i64, tpu.core_type = #tpu.core_type<tc>, window_params = [{transform_indices = @transform_0, window_bounds = array<i64: 384, 64>}, {pipeline_mode = #tpu.pipeline_mode<synchronous>, transform_indices = @transform_1, window_bounds = array<i64: 64, 128>}, {transform_indices = @transform_2, window_bounds = array<i64: 384, 128>}]} {
    %c0 = arith.constant 0 : index
    %c0_0 = arith.constant 0 : index
    %0 = vector.load %arg1[%c0, %c0_0] : memref<384x64xbf16, #tpu.memory_space<vmem>>, vector<384x64xbf16>
    %c0_1 = arith.constant 0 : index
    %c0_2 = arith.constant 0 : index
    %1 = vector.load %arg2[%c0_1, %c0_2] : memref<64x128xbf16, #tpu.memory_space<vmem>>, vector<64x128xbf16>
    %cst = arith.constant dense<0.000000e+00> : vector<384x128xf32>
    %2 = tpu.matmul %0, %1, %cst {dimension_numbers = #tpu.dot_dimension_numbers<[1], [0], [0], [1], [0, 0, 1, 1], [], []>} : vector<384x64xbf16>, vector<64x128xbf16>, vector<384x128xf32> -> vector<384x128xf32>
    %3 = arith.mulf %2, %2 : vector<384x128xf32>
    %cst_3 = arith.constant dense<0.000000e+00> : vector<384xf32>
    %4 = vector.multi_reduction <add>, %3, %cst_3 [1] : vector<384x128xf32> to vector<384xf32>
    %5 = vector.shape_cast %4 : vector<384xf32> to vector<384x1xf32>
    %cst_4 = arith.constant 1.280000e+02 : f32
    %6 = vector.broadcast %cst_4 : f32 to vector<384x1xf32>
    %7 = arith.divf %5, %6 : vector<384x1xf32>
    %8 = math.sqrt %7 : vector<384x1xf32>
    %cst_5 = arith.constant 9.99999974E-5 : f32
    %9 = vector.broadcast %cst_5 : f32 to vector<384x1xf32>
    %10 = arith.addf %9, %8 : vector<384x1xf32>
    %11 = vector.broadcast %10 : vector<384x1xf32> to vector<384x128xf32>
    %12 = arith.divf %2, %11 : vector<384x128xf32>
    %13 = arith.truncf %12 : vector<384x128xf32> to vector<384x128xbf16>
    %c0_6 = arith.constant 0 : index
    %c0_7 = arith.constant 0 : index
    %14 = vector.load %arg3[%c0_6, %c0_7] : memref<384x128xbf16, #tpu.memory_space<vmem>>, vector<384x128xbf16>
    tpu.vector_store %arg3[%c0_6, %c0_7], %13 {strides = array<i32>} : memref<384x128xbf16, #tpu.memory_space<vmem>>, vector<384x128xbf16>,
    return
  }
  func.func @transform_0(%arg0: i32) -> (i32, i32) {
    %c0_i32 = arith.constant 0 : i32
    %c0_i32_0 = arith.constant 0 : i32
    return %arg0, %c0_i32 : i32, i32
  }
  func.func @transform_1(%arg0: i32) -> (i32, i32) {
    %c0_i32 = arith.constant 0 : i32
    %c0_i32_0 = arith.constant 0 : i32
    %c0_i32_1 = arith.constant 0 : i32
    return %c0_i32, %c0_i32_0 : i32, i32
  }
  func.func @transform_2(%arg0: i32) -> (i32, i32) {
    %c0_i32 = arith.constant 0 : i32
    %c0_i32_0 = arith.constant 0 : i32
    return %arg0, %c0_i32 : i32, i32
  }
}

</mosaic_0001>

<bundles_post_ra>
// kernel: tpu_custom_call.1
= control target key start
LH: loop header
LB: loop body
LE: loop exit
PB: predicated region body
PF: predicated region fallthrough
CT: control target
= control target key end

     0   :  { %vm213_vm0 = vcmask 523264   ;;  %s2959_s0 = inlined_call_operand.vmem [shape: bf16[384,64], index: 0, kind: input, shape index: {}]   ;;  %s2960_s1 = inlined_call_operand.vmem [shape: bf16[64,128], index: 1, kind: input, shape index: {}]   ;;  %s2961_s2 = inlined_call_operand.hbm [shape: bf16[384,128], index: 2, kind: output, shape index: {}]  }
   0x1   :  { %v1826_v0 = vld [vmem:[%s2960_s1 + $0x18] sm:$0xff]   ;;  %v1827_v1 = vld [vmem:[%s2960_s1 + $0x10] sm:$0xff]   ;;  %v1828_v2 = vld [vmem:[%s2960_s1 + $0x8] sm:$0xff]  }
   0x2   :  { %1759 = vmatprep.subr.bf16.mxu0 %v1826_v0  ;;  %1815 = vmatprep.subr.bf16.mxu1 %v1826_v0  ;;  %v1830_v3 = vld [vmem:[%s2959_s0] sm:$0xff]   ;;  %v1832_v6 = vld [vmem:[%s2959_s0 + $0x8] sm:$0xff]   ;;  %v1834_v8 = vld [vmem:[%s2959_s0 + $0x10] sm:$0xff]  }
   0x3   :  { %1760 = vmatpush3.bf16.msra.mxu0 %v1826_v0  ;;  %1819 = vmatpush3.bf16.msra.mxu1 %v1826_v0  ;;  %v1831_v4 = vld [vmem:[%s2959_s0 + $0x60] sm:$0xff]   ;;  %v1833_v7 = vld [vmem:[%s2959_s0 + $0x68] sm:$0xff]   ;;  %v1836_v9 = vld [vmem:[%s2959_s0 + $0x70] sm:$0xff]  }
   0x4   :  { %1761 = vmatprep.subr.bf16.mxu0 %v1827_v1  ;;  %1816 = vmatprep.subr.bf16.mxu1 %v1827_v1  ;;  %v1829_v5 = vld [vmem:[%s2960_s1] sm:$0xff]   ;;  %v1835_v10 = vld [vmem:[%s2959_s0 + $0x18] sm:$0xff]  }
   0x5   :  { %1767 = vmatprep.mubr.msk.bf16.mxu0 %vm213_vm0, %v1830_v3  ;;  %1791 = vmatprep.mubr.msk.bf16.mxu1 %vm213_vm0, %v1831_v4  ;;  %v1837_v11 = vld [vmem:[%s2959_s0 + $0x78] sm:$0xff]   ;;  %v1838_v12 = vld [vmem:[%s2959_s0 + $0x20] sm:$0xff]  }
   0x6   :  { %v1840_v13 = vld [vmem:[%s2959_s0 + $0x80] sm:$0xff]  }
   0x7   :  { %1762 = vmatpush3.bf16.msra.mxu0 %v1827_v1  ;;  %1820 = vmatpush3.bf16.msra.mxu1 %v1827_v1 }
   0x8   :  { %1763 = vmatprep.subr.bf16.mxu0 %v1828_v2  ;;  %1817 = vmatprep.subr.bf16.mxu1 %v1828_v2 }
   0xb   :  { %1764 = vmatpush3.bf16.msra.mxu0 %v1828_v2  ;;  %1821 = vmatpush3.bf16.msra.mxu1 %v1828_v2 }
   0xc   :  { %1765 = vmatprep.subr.bf16.mxu0 %v1829_v5  ;;  %1818 = vmatprep.subr.bf16.mxu1 %v1829_v5 }
   0xf   :  { %1766 = vmatpush3.bf16.msra.mxu0 %v1829_v5  ;;  %1822 = vmatpush3.bf16.msra.mxu1 %v1829_v5 }
  0x12   :  { %1768 = vmatmul.mubr.msk.bf16.vlgmr.msra.gmra.mxu0 %vm213_vm0, %v1832_v6  ;;  %1792 = vmatmul.mubr.msk.bf16.vlgmr.msra.gmra.mxu1 %vm213_vm0, %v1833_v7 }
  0x13   :  { %1771 = vmatprep.mubr.msk.bf16.mxu0 %vm213_vm0, %v1834_v8  ;;  %1795 = vmatprep.mubr.msk.bf16.mxu1 %vm213_vm0, %v1836_v9 }
  0x1a   :  { %1772 = vmatmul.mubr.msk.bf16.gmra.mxu0 %vm213_vm0, %v1835_v10  ;;  %1796 = vmatmul.mubr.msk.bf16.gmra.mxu1 %vm213_vm0, %v1837_v11 }
  0x1b   :  { %1775 = vmatprep.mubr.msk.bf16.mxu0 %vm213_vm0, %v1838_v12  ;;  %1799 = vmatprep.mubr.msk.bf16.mxu1 %vm213_vm0, %v1840_v13 }
  0x1c   :  { %7 = vsyncpa [#allocation3], 0  ;;  %v1839_v14 = vld [vmem:[%s2959_s0 + $0x28] sm:$0xff]   ;;  %v1842_v16 = vld [vmem:[%s2959_s0 + $0x30] sm:$0xff]  }
  0x1d   :  { %v1841_v15 = vld [vmem:[%s2959_s0 + $0x88] sm:$0xff]   ;;  %v1844_v17 = vld [vmem:[%s2959_s0 + $0x90] sm:$0xff]   ;;  %v1843_v18 = vld [vmem:[%s2959_s0 + $0x38] sm:$0xff]  }
  0x1e   :  { %v1845_v19 = vld [vmem:[%s2959_s0 + $0x98] sm:$0xff]   ;;  %v1846_v20 = vld [vmem:[%s2959_s0 + $0x40] sm:$0xff]   ;;  %v1847_v22 = vld [vmem:[%s2959_s0 + $0x48] sm:$0xff]  }
  0x1f   :  { %v1848_v21 = vld [vmem:[%s2959_s0 + $0xa0] sm:$0xff]   ;;  %v1849_v23 = vld [vmem:[%s2959_s0 + $0xa8] sm:$0xff]   ;;  %v1850_v24 = vld [vmem:[%s2959_s0 + $0x50] sm:$0xff]  }
  0x20   :  { %v1852_v25 = vld [vmem:[%s2959_s0 + $0xb0] sm:$0xff]   ;;  %v1851_v26 = vld [vmem:[%s2959_s0 + $0x58] sm:$0xff]  }
  0x21   :  { %v1853_v27 = vld [vmem:[%s2959_s0 + $0xb8] sm:$0xff]   ;;  %s2068_s0 = smov [#allocation2]  }
  0x22   :  { %1776 = vmatmul.mubr.msk.bf16.gmra.mxu0 %vm213_vm0, %v1839_v14  ;;  %1800 = vmatmul.mubr.msk.bf16.gmra.mxu1 %vm213_vm0, %v1841_v15  ;;  %s1429_s7 = sshll.u32 %s2068_s0, 4  ;;  %s1430_s7 = int_to_ptr.vmem [resolvable:$true] %s1429_s7 }
  0x23   :  { %1779 = vmatprep.mubr.msk.bf16.mxu0 %vm213_vm0, %v1842_v16  ;;  %1803 = vmatprep.mubr.msk.bf16.mxu1 %vm213_vm0, %v1844_v17  ;;  %s2046_s8 = scalar_lea.vmem %s1430_s7, 3072  ;;  %p2051_p1 = scmp.lt.s32.totalorder %s1430_s7, %s1430_s7 }
  0x24   :  { %p2047_p0 = scmp.ne.s32.totalorder %s1430_s7, %s2046_s8  ;;  %p2052_p2 = scmp.lt.s32.totalorder %s2046_s8, %s2046_s8 }
  0x26   :  { %p2053_p3 = por %p2052_p2, %p2051_p1 }
  0x28   :  { %p2054_p4 = pnand %p2053_p3, %p2047_p0 }
  0x2a   :  { %1780 = vmatmul.mubr.msk.bf16.gmra.mxu0 %vm213_vm0, %v1843_v18  ;;  %1804 = vmatmul.mubr.msk.bf16.gmra.mxu1 %vm213_vm0, %v1845_v19 }
  0x2b   :  { %1783 = vmatprep.mubr.msk.bf16.mxu0 %vm213_vm0, %v1846_v20  ;;  %1807 = vmatprep.mubr.msk.bf16.mxu1 %vm213_vm0, %v1848_v21 }
  0x32   :  { %1784 = vmatmul.mubr.msk.bf16.gmra.mxu0 %vm213_vm0, %v1847_v22  ;;  %1808 = vmatmul.mubr.msk.bf16.gmra.mxu1 %vm213_vm0, %v1849_v23 }
  0x33   :  { %1787 = vmatprep.mubr.msk.bf16.mxu0 %vm213_vm0, %v1850_v24  ;;  %1811 = vmatprep.mubr.msk.bf16.mxu1 %vm213_vm0, %v1852_v25 }
  0x3a   :  { %1788 = vmatmul.mubr.msk.bf16.gmra.mxu0 %vm213_vm0, %v1851_v26  ;;  %1812 = vmatmul.mubr.msk.bf16.gmra.mxu1 %vm213_vm0, %v1853_v27 }
  0xd2   :  { %v2194_v28 = vpop.f32.mrf.mxu0  ;;  %v2196_v29 = vpop.f32.mrf.mxu1 }
  0xd3   :  { %v537_v30 = vmul.f32 %v2196_v29, %v2196_v29  ;;  %v513_v31 = vmul.f32 %v2194_v28, %v2194_v28 }
  0xd4   :  { %v2202_v32 = vpop.f32.mrf.mxu0  ;;  %v2204_v33 = vpop.f32.mrf.mxu1 }
  0xd5   :  { %611 = vadd.xlane.f32.xlu0 %v537_v30  ;;  %563 = vadd.xlane.f32.xlu1 %v513_v31  ;;  %v511_v35 = vmul.f32 %v2202_v32, %v2202_v32  ;;  %v535_v40 = vmul.f32 %v2204_v33, %v2204_v33 }
  0xd6   :  { %v2206_v34 = vpop.f32.mrf.mxu0  ;;  %v2212_v37 = vpop.f32.mrf.mxu1 }
  0xd7   :  { %v514_v36 = vmul.f32 %v2206_v34, %v2206_v34  ;;  %v538_v41 = vmul.f32 %v2212_v37, %v2212_v37 }
  0xd8   :  { %v2214_v38 = vpop.f32.mrf.mxu0  ;;  %v2222_v42 = vpop.f32.mrf.mxu1 }
  0xd9   :  { %559 = vadd.xlane.f32.xlu0 %v511_v35  ;;  %565 = vadd.xlane.f32.xlu1 %v514_v36  ;;  %v536_v45 = vmul.f32 %v2222_v42, %v2222_v42  ;;  %v512_v46 = vmul.f32 %v2214_v38, %v2214_v38 }
  0xda   :  { %v2216_v39 = vpop.f32.mrf.mxu0  ;;  %v2226_v44 = vpop.f32.mrf.mxu1 }
  0xdb   :  { %v517_v49 = vmul.f32 %v2216_v39, %v2216_v39  ;;  %v541_v52 = vmul.f32 %v2226_v44, %v2226_v44 }
  0xdc   :  { %v2224_v43 = vpop.f32.mrf.mxu0  ;;  %v2234_v48 = vpop.f32.mrf.mxu1 }
  0xdd   :  { %607 = vadd.xlane.f32.xlu0 %v535_v40  ;;  %613 = vadd.xlane.f32.xlu1 %v538_v41  ;;  %v515_v56 = vmul.f32 %v2224_v43, %v2224_v43  ;;  %v539_v61 = vmul.f32 %v2234_v48, %v2234_v48 }
  0xde   :  { %v2232_v47 = vpop.f32.mrf.mxu0  ;;  %v2240_v51 = vpop.f32.mrf.mxu1 }
  0xdf   :  { %v518_v50 = vmul.f32 %v2232_v47, %v2232_v47  ;;  %v542_v53 = vmul.f32 %v2240_v51, %v2240_v51 }
  0xe0   :  { %v2246_v54 = vpop.f32.mrf.mxu0  ;;  %v2254_v58 = vpop.f32.mrf.mxu1 }
  0xe1   :  { %609 = vadd.xlane.f32.xlu1 %v536_v45  ;;  %561 = vadd.xlane.f32.xlu0 %v512_v46  ;;  %v516_v57 = vmul.f32 %v2246_v54, %v2246_v54  ;;  %v540_v62 = vmul.f32 %v2254_v58, %v2254_v58 }
  0xe2   :  { %v2248_v55 = vpop.f32.mrf.mxu0  ;;  %v2258_v60 = vpop.f32.mrf.mxu1 }
  0xe3   :  { %v521_v1 = vmul.f32 %v2248_v55, %v2248_v55  ;;  %v545_v4 = vmul.f32 %v2258_v60, %v2258_v60 }
  0xe4   :  { %v2256_v59 = vpop.f32.mrf.mxu0  ;;  %v2266_v0 = vpop.f32.mrf.mxu1 }
  0xe5   :  { %571 = vadd.xlane.f32.xlu0 %v517_v49  ;;  %573 = vadd.xlane.f32.xlu1 %v518_v50  ;;  %v519_v8 = vmul.f32 %v2256_v59, %v2256_v59  ;;  %v543_v13 = vmul.f32 %v2266_v0, %v2266_v0 }
  0xe6   :  { %v2264_v63 = vpop.f32.mrf.mxu0  ;;  %v2272_v3 = vpop.f32.mrf.mxu1 }
  0xe7   :  { %v522_v2 = vmul.f32 %v2264_v63, %v2264_v63  ;;  %v546_v5 = vmul.f32 %v2272_v3, %v2272_v3 }
  0xe8   :  { %v2278_v6 = vpop.f32.mrf.mxu0  ;;  %v2286_v10 = vpop.f32.mrf.mxu1 }
  0xe9   :  { %619 = vadd.xlane.f32.xlu0 %v541_v52  ;;  %621 = vadd.xlane.f32.xlu1 %v542_v53  ;;  %v520_v9 = vmul.f32 %v2278_v6, %v2278_v6  ;;  %v544_v14 = vmul.f32 %v2286_v10, %v2286_v10 }
  0xea   :  { %v2280_v7 = vpop.f32.mrf.mxu0  ;;  %v2290_v12 = vpop.f32.mrf.mxu1 }
  0xeb   :  { %v525_v17 = vmul.f32 %v2280_v7, %v2280_v7  ;;  %v549_v20 = vmul.f32 %v2290_v12, %v2290_v12 }
  0xec   :  { %v2288_v11 = vpop.f32.mrf.mxu0  ;;  %v2298_v16 = vpop.f32.mrf.mxu1 }
  0xed   :  { %567 = vadd.xlane.f32.xlu0 %v515_v56  ;;  %569 = vadd.xlane.f32.xlu1 %v516_v57  ;;  %v523_v24 = vmul.f32 %v2288_v11, %v2288_v11  ;;  %v547_v31 = vmul.f32 %v2298_v16, %v2298_v16 }
  0xee   :  { %v2296_v15 = vpop.f32.mrf.mxu0  ;;  %v2304_v19 = vpop.f32.mrf.mxu1 }
  0xef   :  { %v526_v18 = vmul.f32 %v2296_v15, %v2296_v15  ;;  %v550_v21 = vmul.f32 %v2304_v19, %v2304_v19 }
  0xf0   :  { %v2310_v22 = vpop.f32.mrf.mxu0  ;;  %v2318_v26 = vpop.f32.mrf.mxu1 }
  0xf1   :  { %615 = vadd.xlane.f32.xlu0 %v539_v61  ;;  %617 = vadd.xlane.f32.xlu1 %v540_v62  ;;  %v524_v25 = vmul.f32 %v2310_v22, %v2310_v22  ;;  %v548_v35 = vmul.f32 %v2318_v26, %v2318_v26 }
  0xf2   :  { %v2312_v23 = vpop.f32.mrf.mxu0  ;;  %v2322_v30 = vpop.f32.mrf.mxu1 }
  0xf3   :  { %v529_v41 = vmul.f32 %v2312_v23, %v2312_v23  ;;  %v553_v50 = vmul.f32 %v2322_v30, %v2322_v30 }
  0xf4   :  { %v2320_v27 = vpop.f32.mrf.mxu0  ;;  %v2330_v40 = vpop.f32.mrf.mxu1 }
  0xf5   :  { %579 = vadd.xlane.f32.xlu0 %v521_v1  ;;  %581 = vadd.xlane.f32.xlu1 %v522_v2  ;;  %2973 = vst [vmem:[#allocation5_spill] sm:$0xff] %v2330_v40  ;;  %v527_v57 = vmul.f32 %v2320_v27, %v2320_v27  ;;  %v551_v2 = vmul.f32 %v2330_v40, %v2330_v40 }
  0xf6   :  { %v2328_v36 = vpop.f32.mrf.mxu0  ;;  %v2338_v49 = vpop.f32.mrf.mxu1 }
  0xf7   :  { %v530_v45 = vmul.f32 %v2328_v36, %v2328_v36  ;;  %v554_v52 = vmul.f32 %v2338_v49, %v2338_v49 }
  0xf8   :  { %v2336_v46 = vpop.f32.mrf.mxu0  ;;  %v2346_v56 = vpop.f32.mrf.mxu1 }
  0xf9   :  { %627 = vadd.xlane.f32.xlu0 %v545_v4  ;;  %629 = vadd.xlane.f32.xlu1 %v546_v5  ;;  %2974 = vst [vmem:[#allocation6_spill] sm:$0xff] %v2336_v46  ;;  %2976 = vst [vmem:[#allocation8_spill] sm:$0xff] %v2346_v56  ;;  %v528_v61 = vmul.f32 %v2336_v46, %v2336_v46  ;;  %v552_v4 = vmul.f32 %v2346_v56, %v2346_v56 }
  0xfa   :  { %v2344_v53 = vpop.f32.mrf.mxu0  ;;  %v2354_v1 = vpop.f32.mrf.mxu1 }
  0xfb   :  { %2975 = vst [vmem:[#allocation7_spill] sm:$0xff] %v2344_v53  ;;  %2978 = vst [vmem:[#allocation10_spill] sm:$0xff] %v2354_v1 }
  0xfc   :  { %v2352_v62 = vpop.f32.mrf.mxu0 }
  0xfd   :  { %575 = vadd.xlane.f32.xlu0 %v519_v8  ;;  %577 = vadd.xlane.f32.xlu1 %v520_v9  ;;  %2977 = vst [vmem:[#allocation9_spill] sm:$0xff] %v2352_v62  ;;  %v2362_v8 = vpop.f32.mrf.mxu1  ;;  %v533_v9 = vmul.f32 %v2344_v53, %v2344_v53 }
  0xfe   :  { %v2360_v5 = vpop.f32.mrf.mxu0  ;;  %2980 = vst [vmem:[#allocation12_spill] sm:$0xff] %v2362_v8 }
  0xff   :  { %2979 = vst [vmem:[#allocation11_spill] sm:$0xff] %v2360_v5 }
 0x101   :  { %623 = vadd.xlane.f32.xlu0 %v543_v13  ;;  %625 = vadd.xlane.f32.xlu1 %v544_v14  ;;  %v534_v13 = vmul.f32 %v2360_v5, %v2360_v5  ;;  %v2368_v14 = vpop.f32.mrf.mxu0 }
 0x102   :  { %2981 = vst [vmem:[#allocation13_spill] sm:$0xff] %v2368_v14 }
 0x105   :  { %587 = vadd.xlane.f32.xlu0 %v525_v17  ;;  %589 = vadd.xlane.f32.xlu1 %v526_v18  ;;  %v2370_v17 = vpop.f32.mrf.mxu1  ;;  %v532_v18 = vmul.f32 %v2368_v14, %v2368_v14 }
 0x106   :  { %2982 = vst [vmem:[#allocation14_spill] sm:$0xff] %v2370_v17 }
 0x109   :  { %635 = vadd.xlane.f32.xlu0 %v549_v20  ;;  %637 = vadd.xlane.f32.xlu1 %v550_v21  ;;  %v531_v20 = vmul.f32 %v2352_v62, %v2352_v62  ;;  %v2376_v21 = vpop.f32.mrf.mxu1 }
 0x10a   :  { %2983 = vst [vmem:[#allocation15_spill] sm:$0xff] %v2376_v21 }
 0x10d   :  { %583 = vadd.xlane.f32.xlu0 %v523_v24  ;;  %585 = vadd.xlane.f32.xlu1 %v524_v25  ;;  %v556_v24 = vmul.f32 %v2376_v21, %v2376_v21  ;;  %v555_v25 = vmul.f32 %v2362_v8, %v2362_v8 }
 0x111   :  { %631 = vadd.xlane.f32.xlu0 %v547_v31  ;;  %633 = vadd.xlane.f32.xlu1 %v548_v35  ;;  %v557_v31 = vmul.f32 %v2354_v1, %v2354_v1  ;;  %v558_v35 = vmul.f32 %v2370_v17, %v2370_v17 }
 0x115   :  { %595 = vadd.xlane.f32.xlu0 %v529_v41  ;;  %597 = vadd.xlane.f32.xlu1 %v530_v45 }
 0x119   :  { %643 = vadd.xlane.f32.xlu0 %v553_v50  ;;  %645 = vadd.xlane.f32.xlu1 %v554_v52 }
 0x11d   :  { %591 = vadd.xlane.f32.xlu0 %v527_v57  ;;  %593 = vadd.xlane.f32.xlu1 %v528_v61 }
 0x121   :  { %639 = vadd.xlane.f32.xlu0 %v551_v2  ;;  %641 = vadd.xlane.f32.xlu1 %v552_v4 }
 0x125   :  { %603 = vadd.xlane.f32.xlu0 %v533_v9  ;;  %605 = vadd.xlane.f32.xlu1 %v534_v13 }
 0x129   :  { %599 = vadd.xlane.f32.xlu0 %v531_v20  ;;  %601 = vadd.xlane.f32.xlu1 %v532_v18 }
 0x12d   :  { %647 = vadd.xlane.f32.xlu0 %v555_v25  ;;  %649 = vadd.xlane.f32.xlu1 %v556_v24 }
 0x131   :  { %651 = vadd.xlane.f32.xlu0 %v557_v31  ;;  %653 = vadd.xlane.f32.xlu1 %v558_v35 }
 0x15e   :  { %v612_v41 = vpop.xlane.xlu0 %611  ;;  %v564_v45 = vpop.xlane.xlu1 %563 }
 0x15f   :  { %v682_v50 = vmul.f32 0.0078125, %v612_v41  ;;  %v658_v52 = vmul.f32 0.0078125, %v564_v45 }
 0x161   :  { %1854 = vrsqrt.f32 %v682_v50  ;;  %vm888_vm1 = vcmp.eq.f32.partialorder %v682_v50, inf  ;;  %vm890_vm2 = vcmp.eq.f32.partialorder %v682_v50, 0.0  ;;  %v891_v41 = vand.u32 2147483648, %v682_v50 }
 0x162   :  { %1856 = vrsqrt.f32 %v658_v52  ;;  %v560_v57 = vpop.xlane.xlu0 %559  ;;  %v566_v61 = vpop.xlane.xlu1 %565  ;;  %vm720_vm3 = vcmp.eq.f32.partialorder %v658_v52, inf  ;;  %vm722_vm4 = vcmp.eq.f32.partialorder %v658_v52, 0.0 }
 0x163   :  { %v2386_v2 = vmul.f32 0.0078125, %v560_v57  ;;  %v2388_v4 = vmul.f32 0.0078125, %v566_v61  ;;  %v723_v57 = vand.u32 2147483648, %v658_v52 }
 0x165   :  { %1858 = vrsqrt.f32 %v2386_v2  ;;  %vm706_vm5 = vcmp.eq.f32.partialorder %v2386_v2, inf  ;;  %vm708_vm6 = vcmp.eq.f32.partialorder %v2386_v2, 0.0  ;;  %v709_v21 = vand.u32 2147483648, %v2386_v2 }
 0x166   :  { %1860 = vrsqrt.f32 %v2388_v4  ;;  %v608_v9 = vpop.xlane.xlu0 %607  ;;  %v614_v13 = vpop.xlane.xlu1 %613  ;;  %vm727_vm7 = vcmp.eq.f32.partialorder %v2388_v4, inf  ;;  %vm729_vm8 = vcmp.eq.f32.partialorder %v2388_v4, 0.0  ;;  %v730_v14 = vand.u32 2147483648, %v2388_v4 }
 0x167   :  { %v2392_v18 = vmul.f32 0.0078125, %v608_v9  ;;  %v2394_v20 = vmul.f32 0.0078125, %v614_v13 }
 0x169   :  { %1862 = vrsqrt.f32 %v2392_v18  ;;  %vm874_vm9 = vcmp.eq.f32.partialorder %v2392_v18, inf  ;;  %vm876_vm10 = vcmp.eq.f32.partialorder %v2392_v18, 0.0  ;;  %v877_v56 = vand.u32 2147483648, %v2392_v18 }
 0x16a   :  { %1864 = vrsqrt.f32 %v2394_v20  ;;  %v610_v24 = vpop.xlane.xlu1 %609  ;;  %v562_v25 = vpop.xlane.xlu0 %561  ;;  %vm895_vm11 = vcmp.eq.f32.partialorder %v2394_v20, inf  ;;  %vm897_vm12 = vcmp.eq.f32.partialorder %v2394_v20, 0.0 }
 0x16b   :  { %v2398_v31 = vmul.f32 0.0078125, %v610_v24  ;;  %v2400_v35 = vmul.f32 0.0078125, %v562_v25 }
 0x16d   :  { %1866 = vrsqrt.f32 %v2398_v31  ;;  %vm881_vm13 = vcmp.eq.f32.partialorder %v2398_v31, inf  ;;  %vm883_vm14 = vcmp.eq.f32.partialorder %v2398_v31, 0.0  ;;  %vm713_vm15 = vcmp.eq.f32.partialorder %v2400_v35, inf }
 0x16e   :  { %v1855_v45 = vpop.eup %1854  ;;  %1868 = vrsqrt.f32 %v2400_v35  ;;  %v572_v61 = vpop.xlane.xlu0 %571  ;;  %vm715_vm0 = vcmp.eq.f32.partialorder %v2400_v35, 0.0 }
 0x16f   :  { %v574_v9 = vpop.xlane.xlu1 %573  ;;  %v1857_v13 = vpop.eup %1856  ;;  %v887_v24 = vmul.f32 %v1855_v45, %v682_v50  ;;  %v2406_v25 = vmul.f32 0.0078125, %v572_v61 }
 0x170   :  { %v2408_v17 = vmul.f32 0.0078125, %v574_v9  ;;  %v719_v1 = vmul.f32 %v1857_v13, %v658_v52 }
 0x171   :  { %v889_v8 = vsel %vm888_vm1, %v682_v50, %v887_v24  ;;  %1870 = vrsqrt.f32 %v2406_v25  ;;  %vm748_vm1 = vcmp.eq.f32.partialorder %v2406_v25, inf }
 0x172   :  { %v1859_v45 = vpop.eup %1858  ;;  %v892_v61 = vsel %vm890_vm2, %v891_v41, %v889_v8  ;;  %v721_v9 = vsel %vm720_vm3, %v658_v52, %v719_v1  ;;  %1872 = vrsqrt.f32 %v2408_v17  ;;  %v620_v13 = vpop.xlane.xlu0 %619  ;;  %v898_v1 = vand.u32 2147483648, %v2394_v20 }
 0x173   :  { %v622_v62 = vpop.xlane.xlu1 %621  ;;  %v1861_v5 = vpop.eup %1860  ;;  %v724_v24 = vsel %vm722_vm4, %v723_v57, %v721_v9  ;;  %v705_v53 = vmul.f32 %v1859_v45, %v2386_v2  ;;  %v1066_v50 = vadd.f32 0.0001, %v892_v61  ;;  %v2432_v52 = vmul.f32 0.0078125, %v620_v13 }
 0x174   :  { %v1042_v40 = vadd.f32 0.0001, %v724_v24  ;;  %v726_v8 = vmul.f32 %v1861_v5, %v2388_v4  ;;  %vm750_vm2 = vcmp.eq.f32.partialorder %v2406_v25, 0.0  ;;  %vm755_vm3 = vcmp.eq.f32.partialorder %v2408_v17, inf }
 0x175   :  { %v707_v41 = vsel %vm706_vm5, %v2386_v2, %v705_v53  ;;  %vm757_vm4 = vcmp.eq.f32.partialorder %v2408_v17, 0.0  ;;  %vm916_vm5 = vcmp.eq.f32.partialorder %v2432_v52, inf }
 0x176   :  { %v1863_v57 = vpop.eup %1862  ;;  %1874 = vrcp.f32 %v1042_v40  ;;  %v710_v45 = vsel %vm708_vm6, %v709_v21, %v707_v41  ;;  %v728_v5 = vsel %vm727_vm7, %v2388_v4, %v726_v8  ;;  %v568_v61 = vpop.xlane.xlu0 %567  ;;  %v2444_v40 = vmul.f32 0.0078125, %v622_v62 }
 0x177   :  { %v570_v9 = vpop.xlane.xlu1 %569  ;;  %v1865_v24 = vpop.eup %1864  ;;  %v731_v53 = vsel %vm729_vm8, %v730_v14, %v728_v5  ;;  %v873_v13 = vmul.f32 %v1863_v57, %v2392_v18  ;;  %1876 = vrsqrt.f32 %v2432_v52  ;;  %v1040_v2 = vadd.f32 0.0001, %v710_v45 }
 0x178   :  { %v1043_v21 = vadd.f32 0.0001, %v731_v53  ;;  %v894_v41 = vmul.f32 %v1865_v24, %v2394_v20  ;;  %v884_v8 = vand.u32 2147483648, %v2398_v31  ;;  %1878 = vrcp.f32 %v1066_v50 }
 0x179   :  { %v875_v46 = vsel %vm874_vm9, %v2392_v18, %v873_v13  ;;  %v716_v57 = vand.u32 2147483648, %v2400_v35  ;;  %vm918_vm6 = vcmp.eq.f32.partialorder %v2432_v52, 0.0  ;;  %vm923_vm7 = vcmp.eq.f32.partialorder %v2444_v40, inf }
 0x17a   :  { %v1867_v14 = vpop.eup %1866  ;;  %1880 = vrcp.f32 %v1043_v21  ;;  %v878_v62 = vsel %vm876_vm10, %v877_v56, %v875_v46  ;;  %v896_v4 = vsel %vm895_vm11, %v2394_v20, %v894_v41  ;;  %v616_v50 = vpop.xlane.xlu0 %615  ;;  %v2464_v56 = vmul.f32 0.0078125, %v568_v61 }
 0x17b   :  { %v618_v45 = vpop.xlane.xlu1 %617  ;;  %v1869_v5 = vpop.eup %1868  ;;  %v1064_v24 = vadd.f32 0.0001, %v878_v62  ;;  %v899_v53 = vsel %vm897_vm12, %v898_v1, %v896_v4  ;;  %v880_v13 = vmul.f32 %v1867_v14, %v2398_v31  ;;  %1882 = vrsqrt.f32 %v2444_v40 }
 0x17c   :  { %1884 = vrcp.f32 %v1040_v2  ;;  %v1067_v18 = vadd.f32 0.0001, %v899_v53  ;;  %v712_v46 = vmul.f32 %v1869_v5, %v2400_v35  ;;  %v2476_v61 = vmul.f32 0.0078125, %v570_v9 }
 0x17d   :  { %1886 = vrcp.f32 %v1064_v24  ;;  %v882_v21 = vsel %vm881_vm13, %v2398_v31, %v880_v13  ;;  %v751_v31 = vand.u32 2147483648, %v2406_v25  ;;  %v2484_v53 = vmul.f32 0.0078125, %v616_v50 }
 0x17e   :  { %v1871_v20 = vpop.eup %1870  ;;  %1888 = vrcp.f32 %v1067_v18  ;;  %v885_v1 = vsel %vm883_vm14, %v884_v8, %v882_v21  ;;  %v714_v2 = vsel %vm713_vm15, %v2400_v35, %v712_v46  ;;  %v580_v41 = vpop.xlane.xlu0 %579  ;;  %v758_v35 = vand.u32 2147483648, %v2408_v17 }
 0x17f   :  { %v1873_v14 = vpop.eup %1872  ;;  %v1065_v62 = vadd.f32 0.0001, %v885_v1  ;;  %v717_v4 = vsel %vm715_vm0, %v716_v57, %v714_v2  ;;  %v747_v5 = vmul.f32 %v1871_v20, %v2406_v25  ;;  %1890 = vrsqrt.f32 %v2464_v56  ;;  %v582_v13 = vpop.xlane.xlu1 %581 }
 0x180   :  { %v1041_v24 = vadd.f32 0.0001, %v717_v4  ;;  %v754_v8 = vmul.f32 %v1873_v14, %v2408_v17  ;;  %v919_v14 = vand.u32 2147483648, %v2432_v52  ;;  %vm925_vm8 = vcmp.eq.f32.partialorder %v2444_v40, 0.0 }
 0x181   :  { %1892 = vrcp.f32 %v1065_v62  ;;  %v749_v9 = vsel %vm748_vm1, %v2406_v25, %v747_v5  ;;  %v2503_v62 = vmul.f32 0.0078125, %v618_v45  ;;  %v2505_v4 = vmul.f32 0.0078125, %v580_v41 }
 0x182   :  { %1894 = vrcp.f32 %v1041_v24  ;;  %v752_v57 = vsel %vm750_vm2, %v751_v31, %v749_v9  ;;  %v756_v18 = vsel %vm755_vm3, %v2408_v17, %v754_v8  ;;  %v628_v2 = vpop.xlane.xlu0 %627  ;;  %v926_v9 = vand.u32 2147483648, %v2444_v40 }
 0x183   :  { %v1875_v50 = vpop.eup %1874  ;;  %v1046_v46 = vadd.f32 0.0001, %v752_v57  ;;  %v759_v21 = vsel %vm757_vm4, %v758_v35, %v756_v18  ;;  %1896 = vrsqrt.f32 %v2476_v61  ;;  %v630_v5 = vpop.xlane.xlu1 %629  ;;  %vm734_vm9 = vcmp.eq.f32.partialorder %v2464_v56, inf }
 0x184   :  { %v1877_v20 = vpop.eup %1876  ;;  %v1047_v1 = vadd.f32 0.0001, %v759_v21  ;;  %1898 = vrsqrt.f32 %v2484_v53  ;;  %v1093_v31 = vmul.f32 %v1875_v50, %v2194_v28  ;;  %v2517_v41 = vmul.f32 0.0078125, %v582_v13 }
 0x185   :  { %1900 = vrcp.f32 %v1046_v46  ;;  %v915_v25 = vmul.f32 %v1877_v20, %v2432_v52  ;;  %v1879_v17 = vpop.eup %1878  ;;  %vm736_vm10 = vcmp.eq.f32.partialorder %v2464_v56, 0.0  ;;  %v737_v46 = vand.u32 2147483648, %v2464_v56 }
 0x186   :  { %1902 = vrcp.f32 %v1047_v1  ;;  %vm741_vm11 = vcmp.eq.f32.partialorder %v2476_v61, inf  ;;  %v1141_v13 = vmul.f32 %v1879_v17, %v2196_v29  ;;  %vm743_vm12 = vcmp.eq.f32.partialorder %v2476_v61, 0.0 }
 0x187   :  { %v1881_v24 = vpop.eup %1880  ;;  %v917_v8 = vsel %vm916_vm5, %v2432_v52, %v915_v25  ;;  %1904 = vrsqrt.f32 %v2503_v62  ;;  %v576_v52 = vpop.xlane.xlu0 %575  ;;  %vm902_vm13 = vcmp.eq.f32.partialorder %v2484_v53, inf  ;;  %vm904_vm14 = vcmp.eq.f32.partialorder %v2484_v53, 0.0 }
 0x188   :  { %v1883_v35 = vpop.eup %1882  ;;  %v1095_v57 = vmul.f32 %v1881_v24, %v2206_v34  ;;  %v920_v45 = vsel %vm918_vm6, %v919_v14, %v917_v8  ;;  %1906 = vrsqrt.f32 %v2505_v4  ;;  %v2524_v34 = vmul.f32 0.0078125, %v628_v2  ;;  %v578_v29 = vpop.xlane.xlu1 %577 }
 0x189   :  { %v1885_v18 = vpop.eup %1884  ;;  %v1070_v28 = vadd.f32 0.0001, %v920_v45  ;;  %v922_v50 = vmul.f32 %v1883_v35, %v2444_v40  ;;  %v744_v14 = vand.u32 2147483648, %v2476_v61  ;;  %v2536_v8 = vmul.f32 0.0078125, %v630_v5 }
 0x18a   :  { %v1887_v21 = vpop.eup %1886  ;;  %v1596_v20 = vpack.c.bf16 %v1095_v57, %v1093_v31  ;;  %v1089_v45 = vmul.f32 %v1885_v18, %v2202_v32  ;;  %vm909_vm15 = vcmp.eq.f32.partialorder %v2503_v62, inf  ;;  %vm911_vm0 = vcmp.eq.f32.partialorder %v2503_v62, 0.0 }
 0x18b   :  { %v1889_v1 = vpop.eup %1888  ;;  %1908 = vrcp.f32 %v1070_v28  ;;  %v924_v25 = vsel %vm923_vm7, %v2444_v40, %v922_v50  ;;  %v1137_v5 = vmul.f32 %v1887_v21, %v2204_v33  ;;  %v624_v18 = vpop.xlane.xlu0 %623  ;;  %vm776_vm1 = vcmp.eq.f32.partialorder %v2505_v4, inf }
 0x18c   :  { %v1891_v24 = vpop.eup %1890  ;;  %1708 = vst [vmem:[#allocation2 + $0x8] sm:$0xff] %v1596_v20   ;;  %v1143_v31 = vmul.f32 %v1889_v1, %v2212_v37  ;;  %v927_v2 = vsel %vm925_vm8, %v926_v9, %v924_v25  ;;  %1910 = vrsqrt.f32 %v2517_v41  ;;  %v905_v37 = vand.u32 2147483648, %v2484_v53 }
 0x18d   :  { %v1071_v17 = vadd.f32 0.0001, %v927_v2  ;;  %v733_v35 = vmul.f32 %v1891_v24, %v2464_v56  ;;  %1912 = vrsqrt.f32 %v2524_v34  ;;  %vm778_vm2 = vcmp.eq.f32.partialorder %v2505_v4, 0.0 }
 0x18e   :  { %v1893_v57 = vpop.eup %1892  ;;  %v1656_v28 = vpack.c.bf16 %v1143_v31, %v1141_v13  ;;  %vm783_vm3 = vcmp.eq.f32.partialorder %v2517_v41, inf  ;;  %vm785_vm4 = vcmp.eq.f32.partialorder %v2517_v41, 0.0  ;;  %vm944_vm5 = vcmp.eq.f32.partialorder %v2524_v34, inf }
 0x18f   :  { %v1895_v40 = vpop.eup %1894  ;;  %v1139_v9 = vmul.f32 %v1893_v57, %v2222_v42  ;;  %1914 = vrcp.f32 %v1071_v17  ;;  %v735_v50 = vsel %vm734_vm9, %v2464_v56, %v733_v35  ;;  %v2558_v56 = vmul.f32 0.0078125, %v576_v52 }
 0x190   :  { %v1897_v20 = vpop.eup %1896  ;;  %1720 = vst [vmem:[#allocation2 + $0x68] sm:$0xff] %v1656_v28   ;;  %v1091_v1 = vmul.f32 %v1895_v40, %v2214_v38  ;;  %v738_v32 = vsel %vm736_vm10, %v737_v46, %v735_v50  ;;  %1916 = vrsqrt.f32 %v2536_v8  ;;  %v912_v38 = vand.u32 2147483648, %v2503_v62  ;;  %v626_v46 = vpop.xlane.xlu1 %625 }
 0x191   :  { %v1899_v33 = vpop.eup %1898  ;;  %v1651_v21 = vpack.c.bf16 %v1139_v9, %v1137_v5  ;;  %v1044_v42 = vadd.f32 0.0001, %v738_v32  ;;  %v740_v13 = vmul.f32 %v1897_v20, %v2476_v61  ;;  %v2575_v5 = vmul.f32 0.0078125, %v578_v29  ;;  %v588_v50 = vpop.xlane.xlu0 %587 }
 0x192   :  { %v1901_v25 = vpop.eup %1900  ;;  %v1591_v24 = vpack.c.bf16 %v1091_v1, %v1089_v45  ;;  %v901_v31 = vmul.f32 %v1899_v33, %v2484_v53  ;;  %v2586_v32 = vmul.f32 0.0078125, %v624_v18  ;;  %vm946_vm6 = vcmp.eq.f32.partialorder %v2524_v34, 0.0 }
 0x193   :  { %v1903_v2 = vpop.eup %1902  ;;  %1719 = vst [vmem:[#allocation2 + $0x60] sm:$0xff] %v1651_v21   ;;  %v1101_v17 = vmul.f32 %v1901_v25, %v2216_v39  ;;  %1918 = vrcp.f32 %v1044_v42  ;;  %v742_v35 = vsel %vm741_vm11, %v2476_v61, %v740_v13  ;;  %v2592_v13 = vmul.f32 0.0078125, %v626_v46 }
 0x194   :  { %1592 = vst [vmem:[#allocation2] sm:$0xff] %v1591_v24   ;;  %v1103_v57 = vmul.f32 %v1903_v2, %v2232_v47  ;;  %v745_v45 = vsel %vm743_vm12, %v744_v14, %v742_v35  ;;  %v903_v52 = vsel %vm902_vm13, %v2484_v53, %v901_v31  ;;  %1920 = vrsqrt.f32 %v2558_v56  ;;  %v1905_v39 = vpop.eup %1904  ;;  %v590_v33 = vpop.xlane.xlu1 %589 }
 0x195   :  { %v1045_v28 = vadd.f32 0.0001, %v745_v45  ;;  %v906_v40 = vsel %vm904_vm14, %v905_v37, %v903_v52  ;;  %v908_v61 = vmul.f32 %v1905_v39, %v2503_v62  ;;  %v779_v14 = vand.u32 2147483648, %v2505_v4  ;;  %v1907_v20 = vpop.eup %1906  ;;  %v636_v45 = vpop.xlane.xlu0 %635 }
 0x196   :  { %v1606_v9 = vpack.c.bf16 %v1103_v57, %v1101_v17  ;;  %v1068_v47 = vadd.f32 0.0001, %v906_v40  ;;  %v786_v53 = vand.u32 2147483648, %v2517_v41  ;;  %v775_v1 = vmul.f32 %v1907_v20, %v2505_v4 }
 0x197   :  { %1922 = vrcp.f32 %v1045_v28  ;;  %v910_v29 = vsel %vm909_vm15, %v2503_v62, %v908_v61  ;;  %vm951_vm7 = vcmp.eq.f32.partialorder %v2536_v8, inf  ;;  %vm953_vm8 = vcmp.eq.f32.partialorder %v2536_v8, 0.0 }
 0x198   :  { %v1909_v37 = vpop.eup %1908  ;;  %1710 = vst [vmem:[#allocation2 + $0x18] sm:$0xff] %v1606_v9   ;;  %1924 = vrcp.f32 %v1068_v47  ;;  %v913_v42 = vsel %vm911_vm0, %v912_v38, %v910_v29  ;;  %v777_v24 = vsel %vm776_vm1, %v2505_v4, %v775_v1  ;;  %v947_v38 = vand.u32 2147483648, %v2524_v34  ;;  %v638_v9 = vpop.xlane.xlu1 %637 }
 0x199   :  { %v1911_v21 = vpop.eup %1910  ;;  %1926 = vrsqrt.f32 %v2575_v5  ;;  %v1069_v25 = vadd.f32 0.0001, %v913_v42  ;;  %v1149_v2 = vmul.f32 %v1909_v37, %v2226_v44  ;;  %v780_v62 = vsel %vm778_vm2, %v779_v14, %v777_v24 }
 0x19a   :  { %v782_v31 = vmul.f32 %v1911_v21, %v2517_v41  ;;  %1928 = vrsqrt.f32 %v2586_v32  ;;  %v1913_v18 = vpop.eup %1912  ;;  %v1050_v17 = vadd.f32 0.0001, %v780_v62  ;;  %vm762_vm9 = vcmp.eq.f32.partialorder %v2558_v56, inf }
 0x19b   :  { %1930 = vrcp.f32 %v1069_v25  ;;  %v943_v57 = vmul.f32 %v1913_v18, %v2524_v34  ;;  %vm764_vm10 = vcmp.eq.f32.partialorder %v2558_v56, 0.0  ;;  %v2629_v42 = vmul.f32 0.0078125, %v636_v45  ;;  %v584_v25 = vpop.xlane.xlu0 %583 }
 0x19c   :  { %v1915_v46 = vpop.eup %1914  ;;  %v784_v35 = vsel %vm783_vm3, %v2517_v41, %v782_v31  ;;  %1932 = vrsqrt.f32 %v2592_v13  ;;  %v954_v41 = vand.u32 2147483648, %v2536_v8  ;;  %vm769_vm11 = vcmp.eq.f32.partialorder %v2575_v5, inf  ;;  %v586_v18 = vpop.xlane.xlu1 %585 }
 0x19d   :  { %v1917_v52 = vpop.eup %1916  ;;  %v1151_v44 = vmul.f32 %v1915_v46, %v2240_v51  ;;  %v787_v4 = vsel %vm785_vm4, %v786_v53, %v784_v35  ;;  %1934 = vrcp.f32 %v1050_v17  ;;  %v945_v28 = vsel %vm944_vm5, %v2524_v34, %v943_v57 }
 0x19e   :  { %v1051_v39 = vadd.f32 0.0001, %v787_v4  ;;  %v950_v40 = vmul.f32 %v1917_v52, %v2536_v8  ;;  %v948_v51 = vsel %vm946_vm6, %v947_v38, %v945_v28  ;;  %v2622_v53 = vmul.f32 0.0078125, %v588_v50 }
 0x19f   :  { %v1666_v47 = vpack.c.bf16 %v1151_v44, %v1149_v2  ;;  %v1074_v14 = vadd.f32 0.0001, %v948_v51  ;;  %v2626_v34 = vmul.f32 0.0078125, %v590_v33  ;;  %v765_v50 = vand.u32 2147483648, %v2558_v56  ;;  %v632_v4 = vpop.xlane.xlu0 %631 }
 0x1a0   :  { %v1919_v61 = vpop.eup %1918  ;;  %1936 = vrcp.f32 %v1051_v39  ;;  %v952_v20 = vsel %vm951_vm7, %v2536_v8, %v950_v40  ;;  %vm771_vm12 = vcmp.eq.f32.partialorder %v2575_v5, 0.0  ;;  %v772_v31 = vand.u32 2147483648, %v2575_v5 }
 0x1a1   :  { %v1921_v37 = vpop.eup %1920  ;;  %1722 = vst [vmem:[#allocation2 + $0x78] sm:$0xff] %v1666_v47   ;;  %v955_v29 = vsel %vm953_vm8, %v954_v41, %v952_v20  ;;  %1938 = vrcp.f32 %v1074_v14  ;;  %v1097_v8 = vmul.f32 %v1919_v61, %v2224_v43  ;;  %vm930_vm13 = vcmp.eq.f32.partialorder %v2586_v32, inf  ;;  %v634_v61 = vpop.xlane.xlu1 %633 }
 0x1a2   :  { %v1075_v1 = vadd.f32 0.0001, %v955_v29  ;;  %v761_v21 = vmul.f32 %v1921_v37, %v2558_v56  ;;  %1940 = vrsqrt.f32 %v2622_v53  ;;  %vm932_vm14 = vcmp.eq.f32.partialorder %v2586_v32, 0.0 }
 0x1a3   :  { %v933_v17 = vand.u32 2147483648, %v2586_v32  ;;  %vm937_vm15 = vcmp.eq.f32.partialorder %v2592_v13, inf  ;;  %v2652_v44 = vmul.f32 0.0078125, %v584_v25  ;;  %vm939_vm0 = vcmp.eq.f32.partialorder %v2592_v13, 0.0 }
 0x1a4   :  { %v1923_v24 = vpop.eup %1922  ;;  %1942 = vrcp.f32 %v1075_v1  ;;  %v763_v33 = vsel %vm762_vm9, %v2558_v56, %v761_v21  ;;  %v940_v40 = vand.u32 2147483648, %v2592_v13  ;;  %v2666_v41 = vmul.f32 0.0078125, %v586_v18 }
 0x1a5   :  { %v1925_v2 = vpop.eup %1924  ;;  %v1099_v62 = vmul.f32 %v1923_v24, %v2246_v54  ;;  %v766_v43 = vsel %vm764_vm10, %v765_v50, %v763_v33  ;;  %1944 = vrsqrt.f32 %v2626_v34  ;;  %v2648_v54 = vmul.f32 0.0078125, %v638_v9  ;;  %v596_v50 = vpop.xlane.xlu0 %595 }
 0x1a6   :  { %v1927_v38 = vpop.eup %1926  ;;  %v1048_v46 = vadd.f32 0.0001, %v766_v43  ;;  %1946 = vrsqrt.f32 %v2629_v42  ;;  %v1145_v56 = vmul.f32 %v1925_v2, %v2234_v48  ;;  %vm804_vm1 = vcmp.eq.f32.partialorder %v2622_v53, inf }
 0x1a7   :  { %v1929_v35 = vpop.eup %1928  ;;  %v1601_v57 = vpack.c.bf16 %v1099_v62, %v1097_v8  ;;  %v768_v45 = vmul.f32 %v1927_v38, %v2575_v5  ;;  %vm806_vm2 = vcmp.eq.f32.partialorder %v2622_v53, 0.0  ;;  %vm811_vm3 = vcmp.eq.f32.partialorder %v2626_v34, inf }
 0x1a8   :  { %1948 = vrcp.f32 %v1048_v46  ;;  %v929_v52 = vmul.f32 %v1929_v35, %v2586_v32  ;;  %v1931_v39 = vpop.eup %1930  ;;  %vm813_vm4 = vcmp.eq.f32.partialorder %v2626_v34, 0.0  ;;  %v2689_v43 = vmul.f32 0.0078125, %v634_v61 }
 0x1a9   :  { %1709 = vst [vmem:[#allocation2 + $0x10] sm:$0xff] %v1601_v57   ;;  %v770_v28 = vsel %vm769_vm11, %v2575_v5, %v768_v45  ;;  %1950 = vrsqrt.f32 %v2648_v54  ;;  %v1933_v9 = vpop.eup %1932  ;;  %v1147_v48 = vmul.f32 %v1931_v39, %v2254_v58  ;;  %vm972_vm5 = vcmp.eq.f32.partialorder %v2629_v42, inf }
 0x1aa   :  { %v773_v47 = vsel %vm771_vm12, %v772_v31, %v770_v28  ;;  %v931_v51 = vsel %vm930_vm13, %v2586_v32, %v929_v52  ;;  %v1935_v14 = vpop.eup %1934  ;;  %v936_v29 = vmul.f32 %v1933_v9, %v2592_v13  ;;  %1952 = vrsqrt.f32 %v2652_v44  ;;  %v644_v28 = vpop.xlane.xlu0 %643 }
 0x1ab   :  { %v1049_v20 = vadd.f32 0.0001, %v773_v47  ;;  %v934_v37 = vsel %vm932_vm14, %v933_v17, %v931_v51  ;;  %v1661_v58 = vpack.c.bf16 %v1147_v48, %v1145_v56  ;;  %v1109_v5 = vmul.f32 %v1935_v14, %v2248_v55 }
 0x1ac   :  { %v1072_v1 = vadd.f32 0.0001, %v934_v37  ;;  %v938_v25 = vsel %vm937_vm15, %v2592_v13, %v936_v29  ;;  %v807_v32 = vand.u32 2147483648, %v2622_v53  ;;  %v814_v31 = vand.u32 2147483648, %v2626_v34  ;;  %v598_v13 = vpop.xlane.xlu1 %597 }
 0x1ad   :  { %v1937_v21 = vpop.eup %1936  ;;  %1954 = vrcp.f32 %v1049_v20  ;;  %1721 = vst [vmem:[#allocation2 + $0x70] sm:$0xff] %v1661_v58   ;;  %v941_v55 = vsel %vm939_vm0, %v940_v40, %v938_v25  ;;  %vm974_vm6 = vcmp.eq.f32.partialorder %v2629_v42, 0.0  ;;  %v975_v57 = vand.u32 2147483648, %v2629_v42 }
 0x1ae   :  { %v1111_v8 = vmul.f32 %v1937_v21, %v2264_v63  ;;  %1956 = vrcp.f32 %v1072_v1  ;;  %v1939_v24 = vpop.eup %1938  ;;  %v1073_v33 = vadd.f32 0.0001, %v941_v55  ;;  %v2687_v63 = vmul.f32 0.0078125, %v632_v4 }
 0x1af   :  { %1958 = vrsqrt.f32 %v2666_v41  ;;  %v1941_v18 = vpop.eup %1940  ;;  %v1157_v62 = vmul.f32 %v1939_v24, %v2258_v60  ;;  %v2697_v60 = vmul.f32 0.0078125, %v596_v50  ;;  %vm979_vm7 = vcmp.eq.f32.partialorder %v2648_v54, inf  ;;  %v592_v50 = vpop.xlane.xlu0 %591 }
 0x1b0   :  { %v1616_v2 = vpack.c.bf16 %v1111_v8, %v1109_v5  ;;  %1960 = vrcp.f32 %v1073_v33  ;;  %v803_v46 = vmul.f32 %v1941_v18, %v2622_v53  ;;  %vm981_vm8 = vcmp.eq.f32.partialorder %v2648_v54, 0.0  ;;  %v646_v20 = vpop.xlane.xlu1 %645 }
 0x1b1   :  { %v1943_v38 = vpop.eup %1942  ;;  %1962 = vrsqrt.f32 %v2687_v63  ;;  %v982_v47 = vand.u32 2147483648, %v2648_v54  ;;  %vm790_vm9 = vcmp.eq.f32.partialorder %v2652_v44, inf  ;;  %v2720_v14 = vmul.f32 0.0078125, %v598_v13 }
 0x1b2   :  { %v1945_v17 = vpop.eup %1944  ;;  %1712 = vst [vmem:[#allocation2 + $0x28] sm:$0xff] %v1616_v2   ;;  %v1159_v35 = vmul.f32 %v1943_v38, %v2272_v3  ;;  %v805_v56 = vsel %vm804_vm1, %v2622_v53, %v803_v46  ;;  %1964 = vrsqrt.f32 %v2689_v43  ;;  %vm792_vm10 = vcmp.eq.f32.partialorder %v2652_v44, 0.0 }
 0x1b3   :  { %v1947_v45 = vpop.eup %1946  ;;  %v810_v52 = vmul.f32 %v1945_v17, %v2626_v34  ;;  %v808_v3 = vsel %vm806_vm2, %v807_v32, %v805_v56  ;;  %1966 = vrsqrt.f32 %v2697_v60  ;;  %vm797_vm11 = vcmp.eq.f32.partialorder %v2666_v41, inf }
 0x1b4   :  { %v1676_v4 = vpack.c.bf16 %v1159_v35, %v1157_v62  ;;  %v971_v39 = vmul.f32 %v1947_v45, %v2629_v42  ;;  %v1054_v9 = vadd.f32 0.0001, %v808_v3  ;;  %vm799_vm12 = vcmp.eq.f32.partialorder %v2666_v41, 0.0  ;;  %v594_v38 = vpop.xlane.xlu1 %593  ;;  %v640_v3 = vpop.xlane.xlu0 %639 }
 0x1b5   :  { %v1949_v40 = vpop.eup %1948  ;;  %v812_v48 = vsel %vm811_vm3, %v2626_v34, %v810_v52  ;;  %v793_v34 = vand.u32 2147483648, %v2652_v44  ;;  %v800_v55 = vand.u32 2147483648, %v2666_v41  ;;  %v2745_v62 = vmul.f32 0.0078125, %v644_v28 }
 0x1b6   :  { %v1951_v51 = vpop.eup %1950  ;;  %1724 = vst [vmem:[#allocation2 + $0x88] sm:$0xff] %v1676_v4   ;;  %v815_v53 = vsel %vm813_vm4, %v814_v31, %v812_v48  ;;  %v973_v61 = vsel %vm972_vm5, %v2629_v42, %v971_v39  ;;  %1968 = vrcp.f32 %v1054_v9  ;;  %v1105_v21 = vmul.f32 %v1949_v40, %v2256_v59 }
 0x1b7   :  { %v1055_v37 = vadd.f32 0.0001, %v815_v53  ;;  %v976_v29 = vsel %vm974_vm6, %v975_v57, %v973_v61  ;;  %v978_v58 = vmul.f32 %v1951_v51, %v2648_v54  ;;  %v1953_v5 = vpop.eup %1952  ;;  %v2747_v13 = vmul.f32 0.0078125, %v646_v20 }
 0x1b8   :  { %v1078_v1 = vadd.f32 0.0001, %v976_v29  ;;  %v789_v42 = vmul.f32 %v1953_v5, %v2652_v44  ;;  %vm958_vm13 = vcmp.eq.f32.partialorder %v2687_v63, inf  ;;  %vm960_vm14 = vcmp.eq.f32.partialorder %v2687_v63, 0.0  ;;  %v642_v48 = vpop.xlane.xlu1 %641 }
 0x1b9   :  { %1970 = vrcp.f32 %v1055_v37  ;;  %v980_v25 = vsel %vm979_vm7, %v2648_v54, %v978_v58  ;;  %vm965_vm15 = vcmp.eq.f32.partialorder %v2689_v43, inf  ;;  %vm967_vm0 = vcmp.eq.f32.partialorder %v2689_v43, 0.0 }
 0x1ba   :  { %v1955_v32 = vpop.eup %1954  ;;  %1972 = vrcp.f32 %v1078_v1  ;;  %v983_v8 = vsel %vm981_vm8, %v982_v47, %v980_v25  ;;  %v791_v31 = vsel %vm790_vm9, %v2652_v44, %v789_v42  ;;  %v968_v40 = vand.u32 2147483648, %v2689_v43 }
 0x1bb   :  { %v1957_v24 = vpop.eup %1956  ;;  %v1107_v59 = vmul.f32 %v1955_v32, %v2278_v6  ;;  %v1079_v33 = vadd.f32 0.0001, %v983_v8  ;;  %1974 = vrsqrt.f32 %v2720_v14  ;;  %v794_v54 = vsel %vm792_vm10, %v793_v34, %v791_v31 }
 0x1bc   :  { %v1959_v18 = vpop.eup %1958  ;;  %v1153_v2 = vmul.f32 %v1957_v24, %v2266_v0  ;;  %v1052_v6 = vadd.f32 0.0001, %v794_v54  ;;  %v961_v0 = vand.u32 2147483648, %v2687_v63  ;;  %vm832_vm1 = vcmp.eq.f32.partialorder %v2697_v60, inf }
 0x1bd   :  { %v1611_v46 = vpack.c.bf16 %v1107_v59, %v1105_v21  ;;  %1976 = vrcp.f32 %v1079_v33  ;;  %v796_v17 = vmul.f32 %v1959_v18, %v2666_v41  ;;  %v1961_v35 = vpop.eup %1960  ;;  %vm834_vm2 = vcmp.eq.f32.partialorder %v2697_v60, 0.0  ;;  %v606_v59 = vpop.xlane.xlu1 %605 }
 0x1be   :  { %1978 = vrsqrt.f32 %v2745_v62  ;;  %v1963_v44 = vpop.eup %1962  ;;  %v1155_v57 = vmul.f32 %v1961_v35, %v2286_v10  ;;  %v2778_v61 = vmul.f32 0.0078125, %v594_v38  ;;  %v2786_v34 = vmul.f32 0.0078125, %v640_v3 }
 0x1bf   :  { %1711 = vst [vmem:[#allocation2 + $0x20] sm:$0xff] %v1611_v46   ;;  %1980 = vrcp.f32 %v1052_v6  ;;  %v798_v45 = vsel %vm797_vm11, %v2666_v41, %v796_v17  ;;  %v1965_v56 = vpop.eup %1964  ;;  %v957_v4 = vmul.f32 %v1963_v44, %v2687_v63  ;;  %v2771_v41 = vmul.f32 0.0078125, %v592_v50 }
 0x1c0   :  { %v801_v52 = vsel %vm799_vm12, %v800_v55, %v798_v45  ;;  %1982 = vrsqrt.f32 %v2747_v13  ;;  %v1671_v39 = vpack.c.bf16 %v1155_v57, %v1153_v2  ;;  %v964_v28 = vmul.f32 %v1965_v56, %v2689_v43  ;;  %v1967_v47 = vpop.eup %1966 }
 0x1c1   :  { %v1053_v10 = vadd.f32 0.0001, %v801_v52  ;;  %v959_v9 = vsel %vm958_vm13, %v2687_v63, %v957_v4  ;;  %v831_v58 = vmul.f32 %v1967_v47, %v2697_v60  ;;  %v835_v63 = vand.u32 2147483648, %v2697_v60  ;;  %v602_v52 = vpop.xlane.xlu1 %601 }
 0x1c2   :  { %1723 = vst [vmem:[#allocation2 + $0x80] sm:$0xff] %v1671_v39   ;;  %v962_v51 = vsel %vm960_vm14, %v961_v0, %v959_v9  ;;  %v966_v53 = vsel %vm965_vm15, %v2689_v43, %v964_v28  ;;  %vm839_vm3 = vcmp.eq.f32.partialorder %v2720_v14, inf  ;;  %vm841_vm4 = vcmp.eq.f32.partialorder %v2720_v14, 0.0  ;;  %v604_v43 = vpop.xlane.xlu0 %603 }
 0x1c3   :  { %1984 = vrcp.f32 %v1053_v10  ;;  %v1969_v20 = vpop.eup %1968  ;;  %v1076_v37 = vadd.f32 0.0001, %v962_v51  ;;  %v969_v29 = vsel %vm967_vm0, %v968_v40, %v966_v53  ;;  %v833_v25 = vsel %vm832_vm1, %v2697_v60, %v831_v58 }
 0x1c4   :  { %1986 = vrsqrt.f32 %v2771_v41  ;;  %v1117_v5 = vmul.f32 %v1969_v20, %v2280_v7  ;;  %v1077_v1 = vadd.f32 0.0001, %v969_v29  ;;  %v836_v7 = vsel %vm834_vm2, %v835_v63, %v833_v25 }
 0x1c5   :  { %1988 = vrcp.f32 %v1076_v37  ;;  %v2796_v8 = vmul.f32 0.0078125, %v642_v48  ;;  %v1058_v50 = vadd.f32 0.0001, %v836_v7  ;;  %v842_v24 = vand.u32 2147483648, %v2720_v14  ;;  %v650_v63 = vpop.xlane.xlu1 %649 }
 0x1c6   :  { %v1971_v21 = vpop.eup %1970  ;;  %1990 = vrcp.f32 %v1077_v1  ;;  %vm1000_vm5 = vcmp.eq.f32.partialorder %v2745_v62, inf  ;;  %vm1002_vm6 = vcmp.eq.f32.partialorder %v2745_v62, 0.0  ;;  %v1003_v18 = vand.u32 2147483648, %v2745_v62  ;;  %v600_v0 = vpop.xlane.xlu0 %599 }
 0x1c7   :  { %v1973_v42 = vpop.eup %1972  ;;  %v1119_v32 = vmul.f32 %v1971_v21, %v2296_v15  ;;  %1992 = vrsqrt.f32 %v2778_v61  ;;  %vm1007_vm7 = vcmp.eq.f32.partialorder %v2747_v13, inf  ;;  %vm1009_vm8 = vcmp.eq.f32.partialorder %v2747_v13, 0.0 }
 0x1c8   :  { %v1975_v55 = vpop.eup %1974  ;;  %v1165_v31 = vmul.f32 %v1973_v42, %v2290_v12  ;;  %1994 = vrsqrt.f32 %v2786_v34  ;;  %v1010_v17 = vand.u32 2147483648, %v2747_v13  ;;  %v2817_v35 = vmul.f32 0.0078125, %v604_v43 }
 0x1c9   :  { %v1626_v33 = vpack.c.bf16 %v1119_v32, %v1117_v5  ;;  %v838_v15 = vmul.f32 %v1975_v55, %v2720_v14  ;;  %1996 = vrcp.f32 %v1058_v50  ;;  %vm818_vm9 = vcmp.eq.f32.partialorder %v2771_v41, inf }
 0x1ca   :  { %v1977_v60 = vpop.eup %1976  ;;  %1998 = vrsqrt.f32 %v2796_v8  ;;  %v2820_v45 = vmul.f32 0.0078125, %v606_v59  ;;  %vm820_vm10 = vcmp.eq.f32.partialorder %v2771_v41, 0.0  ;;  %v821_v39 = vand.u32 2147483648, %v2771_v41  ;;  %v648_v20 = vpop.xlane.xlu0 %647 }
 0x1cb   :  { %v1979_v2 = vpop.eup %1978  ;;  %1714 = vst [vmem:[#allocation2 + $0x38] sm:$0xff] %v1626_v33   ;;  %v1167_v54 = vmul.f32 %v1977_v60, %v2304_v19  ;;  %v840_v12 = vsel %vm839_vm3, %v2720_v14, %v838_v15  ;;  %2000 = vrsqrt.f32 %v2817_v35  ;;  %vm825_vm11 = vcmp.eq.f32.partialorder %v2778_v61, inf }
 0x1cc   :  { %v1981_v38 = vpop.eup %1980  ;;  %v843_v46 = vsel %vm841_vm4, %v842_v24, %v840_v12  ;;  %v999_v6 = vmul.f32 %v1979_v2, %v2745_v62  ;;  %vm827_vm12 = vcmp.eq.f32.partialorder %v2778_v61, 0.0  ;;  %v2843_v53 = vmul.f32 0.0078125, %v600_v0 }
 0x1cd   :  { %v1983_v19 = vpop.eup %1982  ;;  %v1686_v44 = vpack.c.bf16 %v1167_v54, %v1165_v31  ;;  %v1059_v57 = vadd.f32 0.0001, %v843_v46  ;;  %v1113_v4 = vmul.f32 %v1981_v38, %v2288_v11  ;;  %vm986_vm13 = vcmp.eq.f32.partialorder %v2786_v34, inf }
 0x1ce   :  { %v1001_v56 = vsel %vm1000_vm5, %v2745_v62, %v999_v6  ;;  %v1006_v14 = vmul.f32 %v1983_v19, %v2747_v13  ;;  %v828_v62 = vand.u32 2147483648, %v2778_v61  ;;  %vm988_vm14 = vcmp.eq.f32.partialorder %v2786_v34, 0.0  ;;  %v652_v6 = vpop.xlane.xlu0 %651  ;;  %v654_v19 = vpop.xlane.xlu1 %653 }
 0x1cf   :  { %1726 = vst [vmem:[#allocation2 + $0x98] sm:$0xff] %v1686_v44   ;;  %2002 = vrcp.f32 %v1059_v57  ;;  %v1004_v3 = vsel %vm1002_vm6, %v1003_v18, %v1001_v56  ;;  %v989_v1 = vand.u32 2147483648, %v2786_v34  ;;  %v2858_v42 = vmul.f32 0.0078125, %v648_v20 }
 0x1d0   :  { %v1985_v10 = vpop.eup %1984  ;;  %v1082_v28 = vadd.f32 0.0001, %v1004_v3  ;;  %v1008_v40 = vsel %vm1007_vm7, %v2747_v13, %v1006_v14  ;;  %2004 = vrsqrt.f32 %v2820_v45  ;;  %vm993_vm15 = vcmp.eq.f32.partialorder %v2796_v8, inf }
 0x1d1   :  { %v1987_v9 = vpop.eup %1986  ;;  %v1115_v48 = vmul.f32 %v1985_v10, %v2310_v22  ;;  %v1011_v11 = vsel %vm1009_vm8, %v1010_v17, %v1008_v40  ;;  %v2847_v22 = vmul.f32 0.0078125, %v602_v52  ;;  %vm995_vm0 = vcmp.eq.f32.partialorder %v2796_v8, 0.0 }
 0x1d2   :  { %2006 = vrcp.f32 %v1082_v28  ;;  %v1083_v47 = vadd.f32 0.0001, %v1011_v11  ;;  %v817_v51 = vmul.f32 %v1987_v9, %v2771_v41  ;;  %v1989_v37 = vpop.eup %1988  ;;  %v996_v33 = vand.u32 2147483648, %v2796_v8 }
 0x1d3   :  { %v1621_v29 = vpack.c.bf16 %v1115_v48, %v1113_v4  ;;  %v1991_v13 = vpop.eup %1990  ;;  %v1161_v58 = vmul.f32 %v1989_v37, %v2298_v16  ;;  %vm860_vm1 = vcmp.eq.f32.partialorder %v2817_v35, inf  ;;  %vm862_vm2 = vcmp.eq.f32.partialorder %v2817_v35, 0.0 }
 0x1d4   :  { %2008 = vrcp.f32 %v1083_v47  ;;  %v819_v5 = vsel %vm818_vm9, %v2771_v41, %v817_v51  ;;  %v1993_v21 = vpop.eup %1992  ;;  %v1163_v25 = vmul.f32 %v1991_v13, %v2318_v26  ;;  %v2865_v26 = vmul.f32 0.0078125, %v650_v63 }
 0x1d5   :  { %1713 = vst [vmem:[#allocation2 + $0x30] sm:$0xff] %v1621_v29   ;;  %v822_v43 = vsel %vm820_vm10, %v821_v39, %v819_v5  ;;  %2010 = vrsqrt.f32 %v2843_v53  ;;  %v1995_v16 = vpop.eup %1994  ;;  %v824_v7 = vmul.f32 %v1993_v21, %v2778_v61  ;;  %v863_v54 = vand.u32 2147483648, %v2817_v35 }
 0x1d6   :  { %v1056_v32 = vadd.f32 0.0001, %v822_v43  ;;  %2012 = vrsqrt.f32 %v2847_v22  ;;  %v1997_v55 = vpop.eup %1996  ;;  %v1681_v50 = vpack.c.bf16 %v1163_v25, %v1161_v58  ;;  %v985_v24 = vmul.f32 %v1995_v16, %v2786_v34 }
 0x1d7   :  { %v1999_v41 = vpop.eup %1998  ;;  %v826_v59 = vsel %vm825_vm11, %v2778_v61, %v824_v7  ;;  %v1125_v61 = vmul.f32 %v1997_v55, %v2312_v23  ;;  %vm867_vm3 = vcmp.eq.f32.partialorder %v2820_v45, inf  ;;  %vm869_vm4 = vcmp.eq.f32.partialorder %v2820_v45, 0.0 }
 0x1d8   :  { %2014 = vrcp.f32 %v1056_v32  ;;  %1725 = vst [vmem:[#allocation2 + $0x90] sm:$0xff] %v1681_v50   ;;  %v829_v31 = vsel %vm827_vm12, %v828_v62, %v826_v59  ;;  %v987_v15 = vsel %vm986_vm13, %v2786_v34, %v985_v24  ;;  %v992_v60 = vmul.f32 %v1999_v41, %v2796_v8  ;;  %v2001_v12 = vpop.eup %2000  ;;  %v2984_v50 = vld [vmem:[#allocation6_spill] sm:$0xff]  ;;  %v2985_v59 = vld [vmem:[#allocation5_spill] sm:$0xff] }
 0x1d9   :  { %2016 = vrsqrt.f32 %v2858_v42  ;;  %v1057_v18 = vadd.f32 0.0001, %v829_v31  ;;  %v990_v2 = vsel %vm988_vm14, %v989_v1, %v987_v15  ;;  %v859_v0 = vmul.f32 %v2001_v12, %v2817_v35 }
 0x1da   :  { %v1080_v38 = vadd.f32 0.0001, %v990_v2  ;;  %v994_v46 = vsel %vm993_vm15, %v2796_v8, %v992_v60  ;;  %2018 = vrsqrt.f32 %v2865_v26  ;;  %v870_v8 = vand.u32 2147483648, %v2820_v45 }
 0x1db   :  { %2020 = vrcp.f32 %v1057_v18  ;;  %v997_v34 = vsel %vm995_vm0, %v996_v33, %v994_v46  ;;  %v861_v56 = vsel %vm860_vm1, %v2817_v35, %v859_v0  ;;  %v2899_v52 = vmul.f32 0.0078125, %v652_v6 }
 0x1dc   :  { %v2003_v17 = vpop.eup %2002  ;;  %2022 = vrcp.f32 %v1080_v38  ;;  %v1081_v57 = vadd.f32 0.0001, %v997_v34  ;;  %v2903_v39 = vmul.f32 0.0078125, %v654_v19  ;;  %vm846_vm5 = vcmp.eq.f32.partialorder %v2843_v53, inf }
 0x1dd   :  { %v2005_v44 = vpop.eup %2004  ;;  %v1127_v23 = vmul.f32 %v2003_v17, %v2328_v36  ;;  %v864_v36 = vsel %vm862_vm2, %v863_v54, %v861_v56  ;;  %v849_v20 = vand.u32 2147483648, %v2843_v53  ;;  %vm848_vm6 = vcmp.eq.f32.partialorder %v2843_v53, 0.0  ;;  %v2986_v54 = vld [vmem:[#allocation8_spill] sm:$0xff]  ;;  %v2988_v56 = vld [vmem:[#allocation11_spill] sm:$0xff] }
 0x1de   :  { %v866_v14 = vmul.f32 %v2005_v44, %v2820_v45  ;;  %2024 = vrcp.f32 %v1081_v57  ;;  %v1062_v28 = vadd.f32 0.0001, %v864_v36  ;;  %vm853_vm7 = vcmp.eq.f32.partialorder %v2847_v22, inf }
 0x1df   :  { %v2007_v4 = vpop.eup %2006  ;;  %v1636_v3 = vpack.c.bf16 %v1127_v23, %v1125_v61  ;;  %2026 = vrsqrt.f32 %v2899_v52  ;;  %vm855_vm8 = vcmp.eq.f32.partialorder %v2847_v22, 0.0  ;;  %vm1014_vm9 = vcmp.eq.f32.partialorder %v2858_v42, inf }
 0x1e0   :  { %v1173_v10 = vmul.f32 %v2007_v4, %v2322_v30  ;;  %v868_v40 = vsel %vm867_vm3, %v2820_v45, %v866_v14  ;;  %2028 = vrcp.f32 %v1062_v28  ;;  %vm1016_vm10 = vcmp.eq.f32.partialorder %v2858_v42, 0.0 }
 0x1e1   :  { %v2009_v9 = vpop.eup %2008  ;;  %1716 = vst [vmem:[#allocation2 + $0x48] sm:$0xff] %v1636_v3   ;;  %v871_v48 = vsel %vm869_vm4, %v870_v8, %v868_v40  ;;  %2030 = vrsqrt.f32 %v2903_v39  ;;  %v1017_v16 = vand.u32 2147483648, %v2858_v42  ;;  %vm1021_vm11 = vcmp.eq.f32.partialorder %v2865_v26, inf }
 0x1e2   :  { %v2011_v11 = vpop.eup %2010  ;;  %v1175_v35 = vmul.f32 %v2009_v9, %v2338_v49  ;;  %v1063_v62 = vadd.f32 0.0001, %v871_v48  ;;  %v856_v49 = vand.u32 2147483648, %v2847_v22  ;;  %vm1023_vm12 = vcmp.eq.f32.partialorder %v2865_v26, 0.0  ;;  %v2989_v9 = vld [vmem:[#allocation9_spill] sm:$0xff] }
 0x1e3   :  { %v2013_v47 = vpop.eup %2012  ;;  %v845_v30 = vmul.f32 %v2011_v11, %v2843_v53  ;;  %vm1028_vm13 = vcmp.eq.f32.partialorder %v2899_v52, inf  ;;  %v1031_v17 = vand.u32 2147483648, %v2899_v52  ;;  %vm1030_vm14 = vcmp.eq.f32.partialorder %v2899_v52, 0.0  ;;  %v2990_v11 = vld [vmem:[#allocation13_spill] sm:$0xff] }
 0x1e4   :  { %v1696_v51 = vpack.c.bf16 %v1175_v35, %v1173_v10  ;;  %2032 = vrcp.f32 %v1063_v62  ;;  %v852_v37 = vmul.f32 %v2013_v47, %v2847_v22  ;;  %vm1035_vm15 = vcmp.eq.f32.partialorder %v2903_v39, inf }
 0x1e5   :  { %v2015_v45 = vpop.eup %2014  ;;  %v847_v29 = vsel %vm846_vm5, %v2843_v53, %v845_v30  ;;  %v1038_v4 = vand.u32 2147483648, %v2903_v39  ;;  %vm1037_vm0 = vcmp.eq.f32.partialorder %v2903_v39, 0.0  ;;  %v2991_v30 = vld [vmem:[#allocation12_spill] sm:$0xff] }
 0x1e6   :  { %v2017_v13 = vpop.eup %2016  ;;  %1728 = vst [vmem:[#allocation2 + $0xa8] sm:$0xff] %v1696_v51   ;;  %v850_v58 = vsel %vm848_vm6, %v849_v20, %v847_v29  ;;  %v854_v5 = vsel %vm853_vm7, %v2847_v22, %v852_v37  ;;  %v1121_v53 = vmul.f32 %v2015_v45, %v2320_v27  ;;  %v1024_v27 = vand.u32 2147483648, %v2865_v26  ;;  %v2992_v37 = vld [vmem:[#allocation15_spill] sm:$0xff] }
 0x1e7   :  { %v1060_v1 = vadd.f32 0.0001, %v850_v58  ;;  %v857_v63 = vsel %vm855_vm8, %v856_v49, %v854_v5  ;;  %v1013_v21 = vmul.f32 %v2017_v13, %v2858_v42  ;;  %v2019_v25 = vpop.eup %2018  ;;  %v2993_v49 = vld [vmem:[#allocation10_spill] sm:$0xff] }
 0x1e8   :  { %v1061_v43 = vadd.f32 0.0001, %v857_v63  ;;  %v2021_v32 = vpop.eup %2020  ;;  %v1020_v22 = vmul.f32 %v2019_v25, %v2865_v26  ;;  %v2994_v5 = vld [vmem:[#allocation14_spill] sm:$0xff] }
 0x1e9   :  { %2034 = vrcp.f32 %v1060_v1  ;;  %v1015_v7 = vsel %vm1014_vm9, %v2858_v42, %v1013_v21  ;;  %v2023_v55 = vpop.eup %2022  ;;  %v1123_v24 = vmul.f32 %v2021_v32, %v2984_v50 }
 0x1ea   :  { %2036 = vrcp.f32 %v1061_v43  ;;  %v1018_v41 = vsel %vm1016_vm10, %v1017_v16, %v1015_v7  ;;  %v1169_v33 = vmul.f32 %v2023_v55, %v2985_v59  ;;  %v1022_v15 = vsel %vm1021_vm11, %v2865_v26, %v1020_v22  ;;  %v2987_v26 = vld [vmem:[#allocation7_spill] sm:$0xff] }
 0x1eb   :  { %v1084_v31 = vadd.f32 0.0001, %v1018_v41  ;;  %v2025_v60 = vpop.eup %2024  ;;  %v1631_v42 = vpack.c.bf16 %v1123_v24, %v1121_v53  ;;  %v1025_v18 = vsel %vm1023_vm12, %v1024_v27, %v1022_v15 }
 0x1ec   :  { %v2027_v2 = vpop.eup %2026  ;;  %v1171_v12 = vmul.f32 %v2025_v60, %v2986_v54  ;;  %v1085_v61 = vadd.f32 0.0001, %v1025_v18 }
 0x1ed   :  { %2038 = vrcp.f32 %v1084_v31  ;;  %1715 = vst [vmem:[#allocation2 + $0x40] sm:$0xff] %v1631_v42   ;;  %v1027_v38 = vmul.f32 %v2027_v2, %v2899_v52  ;;  %v2029_v46 = vpop.eup %2028 }
 0x1ee   :  { %v1691_v6 = vpack.c.bf16 %v1171_v12, %v1169_v33  ;;  %2040 = vrcp.f32 %v1085_v61  ;;  %v2031_v34 = vpop.eup %2030  ;;  %v1133_v0 = vmul.f32 %v2029_v46, %v2987_v26 }
 0x1ef   :  { %v1029_v19 = vsel %vm1028_vm13, %v2899_v52, %v1027_v38  ;;  %v1034_v57 = vmul.f32 %v2031_v34, %v2903_v39 }
 0x1f0   :  { %1727 = vst [vmem:[#allocation2 + $0xa0] sm:$0xff] %v1691_v6   ;;  %v1032_v23 = vsel %vm1030_vm14, %v1031_v17, %v1029_v19 }
 0x1f1   :  { %v2033_v44 = vpop.eup %2032  ;;  %v1086_v8 = vadd.f32 0.0001, %v1032_v23  ;;  %v1036_v3 = vsel %vm1035_vm15, %v2903_v39, %v1034_v57 }
 0x1f2   :  { %v1135_v14 = vmul.f32 %v2033_v44, %v2988_v56  ;;  %v1039_v10 = vsel %vm1037_vm0, %v1038_v4, %v1036_v3 }
 0x1f3   :  { %2042 = vrcp.f32 %v1086_v8  ;;  %v1087_v52 = vadd.f32 0.0001, %v1039_v10 }
 0x1f4   :  { %v1646_v36 = vpack.c.bf16 %v1135_v14, %v1133_v0 }
 0x1f5   :  { %2044 = vrcp.f32 %v1087_v52 }
 0x1f6   :  { %v2035_v28 = vpop.eup %2034  ;;  %1718 = vst [vmem:[#allocation2 + $0x58] sm:$0xff] %v1646_v36  }
 0x1f7   :  { %v2037_v40 = vpop.eup %2036  ;;  %v1129_v48 = vmul.f32 %v2035_v28, %v2989_v9 }
 0x1f8   :  { %v1131_v35 = vmul.f32 %v2037_v40, %v2990_v11 }
 0x1fa   :  { %v2039_v62 = vpop.eup %2038  ;;  %v1641_v47 = vpack.c.bf16 %v1131_v35, %v1129_v48 }
 0x1fb   :  { %v1177_v51 = vmul.f32 %v2039_v62, %v2991_v30  ;;  %v2041_v20 = vpop.eup %2040 }
 0x1fc   :  { %1717 = vst [vmem:[#allocation2 + $0x50] sm:$0xff] %v1641_v47   ;;  %v1179_v39 = vmul.f32 %v2041_v20, %v2992_v37 }
 0x1fe   :  { %v1701_v45 = vpack.c.bf16 %v1179_v39, %v1177_v51 }
 0x200   :  { %v2043_v29 = vpop.eup %2042  ;;  %1729 = vst [vmem:[#allocation2 + $0xb0] sm:$0xff] %v1701_v45  }
 0x201   :  { %v1181_v13 = vmul.f32 %v2043_v29, %v2993_v49 }
 0x202   :  { %v2045_v58 = vpop.eup %2044 }
 0x203   :  { %v1183_v1 = vmul.f32 %v2045_v58, %v2994_v5 }
 0x205   :  { %v1706_v63 = vpack.c.bf16 %v1183_v1, %v1181_v13 }
 0x207   :  { %1730 = vst [vmem:[#allocation2 + $0xb8] sm:$0xff] %v1706_v63  }
 0x208   :  { %2057 = shalt.err (!%p2054_p4)
}
 0x209   :  { %s2069_s9 = smov 64   ;;  %s2070_s10 = smov 4  }
 0x20a   :  { %1435 = dma.vmem_to_hbm [thread:$0]  %s1430_s7, 3072, %s2961_s2, [#allocation3], %s2069_s9, %s2069_s9, %s2070_s10  }
 0x20b   :  { %2066 = dma.done.wait [#allocation3], 3072  }
 0x20c   :  { %2067 = vsyncadd [#allocation3], 4294964224 }
 0x20d   :  { %1439 = vsyncpa [#allocation3], 1 }

</bundles_post_ra>
